<compile_context>
chip_gen: v5e
topology: v5e:2x2
jax: 0.10.0
libtpu: 0.0.40
codegen_flags: <defaults>
</compile_context>

<pallas_src>
import functools

import jax
import jax.numpy as jnp
import numpy as np
from jax.experimental import pallas as pl
from jax.experimental.pallas import tpu as pltpu


def make_mdn_lstm_kernel(state_space, hidden, gaussians, num_layers, T, B, head_pad):
    S, H, G, L, P = state_space, hidden, gaussians, num_layers, head_pad
    GS = G * S
    fourH = 4 * H
    f32 = jnp.float32

    def lstm_cell(gates, c_prev):
        # Gate pre-activations arrive pre-scaled (i/f/o columns already * 0.5, folded
        # into the packed weights), so one full-width tanh + scalar affine gives
        # sigmoid(z) = 0.5*tanh(z/2) + 0.5 with no iota / compare / select.
        th = jnp.tanh(gates)                      # single full-width EUP pass
        i_g = 0.5 * th[:, 0:H] + 0.5
        g_g = th[:, 2 * H:3 * H]
        o_g = 0.5 * th[:, 3 * H:4 * H] + 0.5
        if c_prev is None:                        # t == 0: c_prev == 0 -> skip f*c
            c_new = i_g * g_g
        else:
            f_g = 0.5 * th[:, H:2 * H] + 0.5
            c_new = f_g * c_prev + i_g * g_g
        h_new = o_g * jnp.tanh(c_new)
        return h_new, c_new

    def kernel(x_ref, wih0_ref, whh0_ref, b0_ref, *refs):
        deep = refs[:3 * (L - 1)]                 # (wih_l, whh_l, b_l) per deep layer
        whead_ref = refs[3 * (L - 1)]
        bhead_ref = refs[3 * (L - 1) + 1]
        out_ref = refs[3 * (L - 1) + 2]
        xg_ref = refs[3 * (L - 1) + 3]            # (T*B, 4H) VMEM scratch

        # Hoisted layer-0 input projection (+ fused bias) for ALL timesteps; staged
        # through VMEM so per-step reads use the vld slot instead of sublane shifts.
        xg_ref[...] = (jnp.dot(x_ref[...], wih0_ref[...], preferred_element_type=f32)
                       + b0_ref[...])

        # Hoist deep-layer bias broadcasts out of the unrolled loop (JAX does not CSE
        # broadcast_in_dim).
        deep_bias = [jnp.broadcast_to(deep[3 * i + 2][...], (B, fourH))
                     for i in range(L - 1)]

        h = [None] * L                            # zero init, as in the module
        c = [None] * L
        h_top = []

        for t in range(T):                        # T static & small -> fully unrolled
            x_t = xg_ref[t * B:(t + 1) * B, :]    # aligned-ref load, not vreg slicing
            if h[0] is None:
                gates = x_t
            else:
                gates = x_t + jnp.dot(h[0], whh0_ref[...], preferred_element_type=f32)
            h[0], c[0] = lstm_cell(gates, c[0])
            inp = h[0]

            for l in range(1, L):
                wih_ref = deep[3 * (l - 1)]
                whh_ref = deep[3 * (l - 1) + 1]
                # Split input/recurrent dots: the recurrent term only depends on the
                # t-1 state, so it can overlap the lower layer; no per-step lane concat.
                gates = (jnp.dot(inp, wih_ref[...], preferred_element_type=f32)
                         + deep_bias[l - 1])
                if h[l] is not None:
                    gates = gates + jnp.dot(h[l], whh_ref[...],
                                            preferred_element_type=f32)
                h[l], c[l] = lstm_cell(gates, c[l])
                inp = h[l]

            h_top.append(inp)                     # stays in vregs (no hbuf round trip)

        # ---- fused MDN heads over all timesteps: one (T*B, H) x (H, 3P) matmul ----
        s_all = jnp.concatenate(h_top, axis=0)                          # (T*B, H)
        lin = jnp.dot(s_all, whead_ref[...], preferred_element_type=f32) + bhead_ref[...]

        pi_lin = lin[:, 0:P]                      # lane-tile aligned head slices
        sg_lin = lin[:, P:2 * P]
        mu_lin = lin[:, 2 * P:3 * P]

        # Softmax over the gaussian axis (feature j = g*S + s): per-g slices, no
        # G-copy lane broadcasts.
        m = pi_lin[:, 0:S]
        for g in range(1, G):
            m = jnp.maximum(m, pi_lin[:, g * S:(g + 1) * S])
        e = [jnp.exp(pi_lin[:, g * S:(g + 1) * S] - m) for g in range(G)]
        den = e[0]
        for g in range(1, G):
            den = den + e[g]
        inv = pl.reciprocal(den, approx=False)    # exact: tightest numerical point
        pi_parts = [e_g * inv for e_g in e]
        if GS < P:                                # refill padded lanes (discarded by
            pi_parts.append(pi_lin[:, GS:P])      # the wrapper) to stay lane-dense
        pi_full = jnp.concatenate(pi_parts, axis=-1)                    # (T*B, P)

        # Three lane-tile-aligned, unmasked stores (total width 3P is lane-dense).
        out_ref[:, 0:P] = pi_full
        out_ref[:, P:2 * P] = jnp.exp(sg_lin)
        out_ref[:, 2 * P:3 * P] = mu_lin

    return kernel


def pack_mdn_lstm_params(params, gaussians):
    """One-time parameter packing: transposes, gate pre-scales, bias fusion, per-head
    lane padding. Call ONCE and reuse across forward calls (this is off the per-call
    path by design)."""
    lstm = params["lstm"]
    L = len(lstm)
    H = lstm[0][1].shape[-1]
    GS = params["heads"]["pi"][0].shape[0]

    # PyTorch gate order i, f, g, o: fold sigmoid's z/2 pre-scale into i/f/o columns.
    col_scale = jnp.concatenate([jnp.full((2 * H,), 0.5, jnp.float32),
                                 jnp.ones((H,), jnp.float32),
                                 jnp.full((H,), 0.5, jnp.float32)])

    def prescale_t(w):                            # (4H, din) -> (din, 4H), pre-scaled
        return (w.T * col_scale).astype(jnp.float32)

    def prescale_b(bih, bhh):
        return ((bih + bhh) * col_scale).reshape(1, -1).astype(jnp.float32)

    Wih0, Whh0, bih0, bhh0 = lstm[0]
    packed = {
        "wih0": prescale_t(Wih0),                 # (Din, 4H)
        "whh0": prescale_t(Whh0),                 # (H, 4H)
        "b0": prescale_b(bih0, bhh0),             # (1, 4H)
        "wih_deep": [], "whh_deep": [], "b_deep": [],
    }
    for l in range(1, L):
        Wih, Whh, bih, bhh = lstm[l]
        packed["wih_deep"].append(prescale_t(Wih))
        packed["whh_deep"].append(prescale_t(Whh))
        packed["b_deep"].append(prescale_b(bih, bhh))

    # MDN heads: each head zero-padded to a multiple of 128 lanes so in-kernel head
    # slices fall on vreg lane boundaries and the writeback is unmasked/lane-dense.
    P = ((GS + 127) // 128) * 128

    def pad_w(w):                                 # (GS, H) -> (H, P)
        return jnp.pad(w.T.astype(jnp.float32), ((0, 0), (0, P - GS)))

    def pad_b(b):
        return jnp.pad(b.astype(jnp.float32), (0, P - GS))

    Wpi, bpi = params["heads"]["pi"]
    Wsg, bsg = params["heads"]["sigma"]
    Wmu, bmu = params["heads"]["mean"]
    packed["whead"] = jnp.concatenate([pad_w(Wpi), pad_w(Wsg), pad_w(Wmu)], axis=1)  # (H, 3P)
    packed["bhead"] = jnp.concatenate([pad_b(bpi), pad_b(bsg), pad_b(bmu)]).reshape(1, -1)
    return jax.tree_util.tree_map(jnp.asarray, packed)


def mdn_lstm_forward(states, actions, packed, *, gaussians):
    T, B, S = states.shape
    G = gaussians
    GS = G * S
    H = packed["whh0"].shape[0]
    L = 1 + len(packed["wih_deep"])
    P = packed["whead"].shape[1] // 3
    Din = packed["wih0"].shape[0]

    x = jnp.concatenate([states, actions], axis=-1).astype(jnp.float32)
    x = x.reshape(T * B, Din)

    args = [x, packed["wih0"], packed["whh0"], packed["b0"]]
    for l in range(L - 1):
        args += [packed["wih_deep"][l], packed["whh_deep"][l], packed["b_deep"][l]]
    args += [packed["whead"], packed["bhead"]]

    kernel = make_mdn_lstm_kernel(S, H, G, L, T, B, P)
    vmem = pl.BlockSpec(memory_space=pltpu.MemorySpace.VMEM)

    out = pl.pallas_call(
        kernel,
        out_shape=jax.ShapeDtypeStruct((T * B, 3 * P), jnp.float32),
        in_specs=[vmem] * len(args),
        out_specs=vmem,
        scratch_shapes=[pltpu.VMEM((T * B, 4 * H), jnp.float32)],   # staged xg
    )(*args)

    pi = out[:, 0:GS].reshape(T, B, G, S)
    sigma = out[:, P:P + GS].reshape(T, B, G, S)
    mu = out[:, 2 * P:2 * P + GS].reshape(T, B, G, S)
    return pi, sigma, mu


def init_params(key, state_space, action_space, hidden, gaussians, num_layers):
    S, A, H, G, L = state_space, action_space, hidden, gaussians, num_layers
    k = 1.0 / np.sqrt(H)
    keys = jax.random.split(key, 4 * L + 6)
    idx = 0
    params = {"lstm": [], "heads": {}}
    for l in range(L):
        din = S + A if l == 0 else H
        Wih = jax.random.uniform(keys[idx], (4 * H, din), minval=-k, maxval=k); idx += 1
        Whh = jax.random.uniform(keys[idx], (4 * H, H), minval=-k, maxval=k); idx += 1
        bih = jax.random.uniform(keys[idx], (4 * H,), minval=-k, maxval=k); idx += 1
        bhh = jax.random.uniform(keys[idx], (4 * H,), minval=-k, maxval=k); idx += 1
        params["lstm"].append((Wih, Whh, bih, bhh))
    for name in ("pi", "sigma", "mean"):
        W = jax.random.uniform(keys[idx], (G * S, H), minval=-k, maxval=k); idx += 1
        b = jax.random.uniform(keys[idx], (G * S,), minval=-k, maxval=k); idx += 1
        params["heads"][name] = (W, b)
    return params


def mdn_lstm_ref(states, actions, params, gaussians):
    """Pure-JAX reference matching torch semantics exactly."""
    x = jnp.concatenate([states, actions], axis=-1)
    T, B, _ = x.shape
    L = len(params["lstm"])
    H = params["lstm"][0][1].shape[-1]
    S = states.shape[-1]
    G = gaussians
    hs = [jnp.zeros((B, H), jnp.float32) for _ in range(L)]
    cs = [jnp.zeros((B, H), jnp.float32) for _ in range(L)]
    outs = []
    for t in range(T):
        inp = x[t]
        for l in range(L):
            Wih, Whh, bih, bhh = params["lstm"][l]
            gates = inp @ Wih.T + bih + hs[l] @ Whh.T + bhh
            i_g = jax.nn.sigmoid(gates[:, 0:H])
            f_g = jax.nn.sigmoid(gates[:, H:2 * H])
            g_g = jnp.tanh(gates[:, 2 * H:3 * H])
            o_g = jax.nn.sigmoid(gates[:, 3 * H:4 * H])
            cs[l] = f_g * cs[l] + i_g * g_g
            hs[l] = o_g * jnp.tanh(cs[l])
            inp = hs[l]
        outs.append(inp)
    s = jnp.stack(outs, axis=0)  # (T, B, H)
    Wpi, bpi = params["heads"]["pi"]
    Wsg, bsg = params["heads"]["sigma"]
    Wmu, bmu = params["heads"]["mean"]
    pi = jax.nn.softmax((s @ Wpi.T + bpi).reshape(T, B, G, S), axis=2)
    sigma = jnp.exp(s @ Wsg.T + bsg).reshape(T, B, G, S)
    mu = (s @ Wmu.T + bmu).reshape(T, B, G, S)
    return pi, sigma, mu


if __name__ == "__main__":
    # small shapes consistent with the module
    state_space, action_space, lstm_hidden, gaussians, num_lstm_layers = 8, 4, 32, 5, 2
    T, B = 8, 2  # sequence length, batch

    key = jax.random.PRNGKey(0)
    kp, ks, ka = jax.random.split(key, 3)
    params = init_params(kp, state_space, action_space, lstm_hidden, gaussians,
                         num_lstm_layers)
    states = jax.random.normal(ks, (T, B, state_space), dtype=jnp.float32)
    actions = jax.random.normal(ka, (T, B, action_space), dtype=jnp.float32)

    # Pack parameters ONCE (amortized across forward calls), then jit the forward.
    packed = pack_mdn_lstm_params(params, gaussians)
    forward = jax.jit(functools.partial(mdn_lstm_forward, gaussians=gaussians))

    pi, sigma, mu = forward(states, actions, packed)
    jax.block_until_ready((pi, sigma, mu))

    pi_r, sg_r, mu_r = mdn_lstm_ref(states, actions, params, gaussians)
    np.testing.assert_allclose(np.asarray(pi), np.asarray(pi_r), rtol=2e-3, atol=2e-3)
    np.testing.assert_allclose(np.asarray(sigma), np.asarray(sg_r), rtol=2e-3, atol=2e-3)
    np.testing.assert_allclose(np.asarray(mu), np.asarray(mu_r), rtol=2e-3, atol=2e-3)

    print("KERNEL_OK")
</pallas_src>

<mosaic_0001>
module attributes {stable_mosaic.version = 11 : i64} {
  func.func @kernel(%arg0: memref<16x12xf32, #tpu.memory_space<vmem>>, %arg1: memref<12x128xf32, #tpu.memory_space<vmem>>, %arg2: memref<32x128xf32, #tpu.memory_space<vmem>>, %arg3: memref<1x128xf32, #tpu.memory_space<vmem>>, %arg4: memref<32x128xf32, #tpu.memory_space<vmem>>, %arg5: memref<32x128xf32, #tpu.memory_space<vmem>>, %arg6: memref<1x128xf32, #tpu.memory_space<vmem>>, %arg7: memref<32x384xf32, #tpu.memory_space<vmem>>, %arg8: memref<1x384xf32, #tpu.memory_space<vmem>>, %arg9: memref<16x384xf32, #tpu.memory_space<vmem>>, %arg10: memref<16x128xf32, #tpu.memory_space<vmem>>) attributes {dimension_semantics = [], scalar_prefetch = 0 : i64, scratch_operands = 1 : i64, tpu.core_type = #tpu.core_type<tc>} {
    %c0 = arith.constant 0 : index
    %c0_0 = arith.constant 0 : index
    %0 = vector.load %arg0[%c0, %c0_0] : memref<16x12xf32, #tpu.memory_space<vmem>>, vector<16x12xf32>
    %c0_1 = arith.constant 0 : index
    %c0_2 = arith.constant 0 : index
    %1 = vector.load %arg1[%c0_1, %c0_2] : memref<12x128xf32, #tpu.memory_space<vmem>>, vector<12x128xf32>
    %cst = arith.constant dense<0.000000e+00> : vector<16x128xf32>
    %2 = tpu.matmul %0, %1, %cst {dimension_numbers = #tpu.dot_dimension_numbers<[1], [0], [0], [1], [0, 0, 1, 1], [], []>} : vector<16x12xf32>, vector<12x128xf32>, vector<16x128xf32> -> vector<16x128xf32>
    %c0_3 = arith.constant 0 : index
    %c0_4 = arith.constant 0 : index
    %3 = vector.load %arg3[%c0_3, %c0_4] : memref<1x128xf32, #tpu.memory_space<vmem>>, vector<1x128xf32>
    %4 = vector.broadcast %3 : vector<1x128xf32> to vector<16x128xf32>
    %5 = arith.addf %2, %4 : vector<16x128xf32>
    %c0_5 = arith.constant 0 : index
    %c0_6 = arith.constant 0 : index
    %6 = vector.load %arg10[%c0_5, %c0_6] : memref<16x128xf32, #tpu.memory_space<vmem>>, vector<16x128xf32>
    tpu.vector_store %arg10[%c0_5, %c0_6], %5 {strides = array<i32>} : memref<16x128xf32, #tpu.memory_space<vmem>>, vector<16x128xf32>,
    %c0_7 = arith.constant 0 : index
    %c0_8 = arith.constant 0 : index
    %7 = vector.load %arg6[%c0_7, %c0_8] : memref<1x128xf32, #tpu.memory_space<vmem>>, vector<1x128xf32>
    %8 = vector.shape_cast %7 : vector<1x128xf32> to vector<1x128xf32>
    %9 = vector.broadcast %8 : vector<1x128xf32> to vector<2x128xf32>
    %c0_9 = arith.constant 0 : index
    %c0_10 = arith.constant 0 : index
    %10 = vector.load %arg10[%c0_9, %c0_10] : memref<16x128xf32, #tpu.memory_space<vmem>>, vector<2x128xf32>
    %11 = math.tanh %10 : vector<2x128xf32>
    %12 = vector.extract_strided_slice %11 {offsets = [0, 0], sizes = [2, 32], strides = [1, 1]} : vector<2x128xf32> to vector<2x32xf32>
    %cst_11 = arith.constant 5.000000e-01 : f32
    %13 = vector.broadcast %cst_11 : f32 to vector<2x32xf32>
    %14 = arith.mulf %13, %12 : vector<2x32xf32>
    %cst_12 = arith.constant 5.000000e-01 : f32
    %15 = vector.broadcast %cst_12 : f32 to vector<2x32xf32>
    %16 = arith.addf %14, %15 : vector<2x32xf32>
    %17 = vector.extract_strided_slice %11 {offsets = [0, 64], sizes = [2, 32], strides = [1, 1]} : vector<2x128xf32> to vector<2x32xf32>
    %18 = vector.extract_strided_slice %11 {offsets = [0, 96], sizes = [2, 32], strides = [1, 1]} : vector<2x128xf32> to vector<2x32xf32>
    %cst_13 = arith.constant 5.000000e-01 : f32
    %19 = vector.broadcast %cst_13 : f32 to vector<2x32xf32>
    %20 = arith.mulf %19, %18 : vector<2x32xf32>
    %cst_14 = arith.constant 5.000000e-01 : f32
    %21 = vector.broadcast %cst_14 : f32 to vector<2x32xf32>
    %22 = arith.addf %20, %21 : vector<2x32xf32>
    %23 = arith.mulf %16, %17 : vector<2x32xf32>
    %24 = math.tanh %23 : vector<2x32xf32>
    %25 = arith.mulf %22, %24 : vector<2x32xf32>
    %c0_15 = arith.constant 0 : index
    %c0_16 = arith.constant 0 : index
    %26 = vector.load %arg4[%c0_15, %c0_16] : memref<32x128xf32, #tpu.memory_space<vmem>>, vector<32x128xf32>
    %cst_17 = arith.constant dense<0.000000e+00> : vector<2x128xf32>
    %27 = tpu.matmul %25, %26, %cst_17 {dimension_numbers = #tpu.dot_dimension_numbers<[1], [0], [0], [1], [0, 0, 1, 1], [], []>} : vector<2x32xf32>, vector<32x128xf32>, vector<2x128xf32> -> vector<2x128xf32>
    %28 = arith.addf %27, %9 : vector<2x128xf32>
    %29 = math.tanh %28 : vector<2x128xf32>
    %30 = vector.extract_strided_slice %29 {offsets = [0, 0], sizes = [2, 32], strides = [1, 1]} : vector<2x128xf32> to vector<2x32xf32>
    %cst_18 = arith.constant 5.000000e-01 : f32
    %31 = vector.broadcast %cst_18 : f32 to vector<2x32xf32>
    %32 = arith.mulf %31, %30 : vector<2x32xf32>
    %cst_19 = arith.constant 5.000000e-01 : f32
    %33 = vector.broadcast %cst_19 : f32 to vector<2x32xf32>
    %34 = arith.addf %32, %33 : vector<2x32xf32>
    %35 = vector.extract_strided_slice %29 {offsets = [0, 64], sizes = [2, 32], strides = [1, 1]} : vector<2x128xf32> to vector<2x32xf32>
    %36 = vector.extract_strided_slice %29 {offsets = [0, 96], sizes = [2, 32], strides = [1, 1]} : vector<2x128xf32> to vector<2x32xf32>
    %cst_20 = arith.constant 5.000000e-01 : f32
    %37 = vector.broadcast %cst_20 : f32 to vector<2x32xf32>
    %38 = arith.mulf %37, %36 : vector<2x32xf32>
    %cst_21 = arith.constant 5.000000e-01 : f32
    %39 = vector.broadcast %cst_21 : f32 to vector<2x32xf32>
    %40 = arith.addf %38, %39 : vector<2x32xf32>
    %41 = arith.mulf %34, %35 : vector<2x32xf32>
    %42 = math.tanh %41 : vector<2x32xf32>
    %43 = arith.mulf %40, %42 : vector<2x32xf32>
    %c2 = arith.constant 2 : index
    %c0_22 = arith.constant 0 : index
    %44 = vector.load %arg10[%c2, %c0_22] : memref<16x128xf32, #tpu.memory_space<vmem>>, vector<2x128xf32>
    %c0_23 = arith.constant 0 : index
    %c0_24 = arith.constant 0 : index
    %45 = vector.load %arg2[%c0_23, %c0_24] : memref<32x128xf32, #tpu.memory_space<vmem>>, vector<32x128xf32>
    %cst_25 = arith.constant dense<0.000000e+00> : vector<2x128xf32>
    %46 = tpu.matmul %25, %45, %cst_25 {dimension_numbers = #tpu.dot_dimension_numbers<[1], [0], [0], [1], [0, 0, 1, 1], [], []>} : vector<2x32xf32>, vector<32x128xf32>, vector<2x128xf32> -> vector<2x128xf32>
    %47 = arith.addf %44, %46 : vector<2x128xf32>
    %48 = math.tanh %47 : vector<2x128xf32>
    %49 = vector.extract_strided_slice %48 {offsets = [0, 0], sizes = [2, 32], strides = [1, 1]} : vector<2x128xf32> to vector<2x32xf32>
    %cst_26 = arith.constant 5.000000e-01 : f32
    %50 = vector.broadcast %cst_26 : f32 to vector<2x32xf32>
    %51 = arith.mulf %50, %49 : vector<2x32xf32>
    %cst_27 = arith.constant 5.000000e-01 : f32
    %52 = vector.broadcast %cst_27 : f32 to vector<2x32xf32>
    %53 = arith.addf %51, %52 : vector<2x32xf32>
    %54 = vector.extract_strided_slice %48 {offsets = [0, 64], sizes = [2, 32], strides = [1, 1]} : vector<2x128xf32> to vector<2x32xf32>
    %55 = vector.extract_strided_slice %48 {offsets = [0, 96], sizes = [2, 32], strides = [1, 1]} : vector<2x128xf32> to vector<2x32xf32>
    %cst_28 = arith.constant 5.000000e-01 : f32
    %56 = vector.broadcast %cst_28 : f32 to vector<2x32xf32>
    %57 = arith.mulf %56, %55 : vector<2x32xf32>
    %cst_29 = arith.constant 5.000000e-01 : f32
    %58 = vector.broadcast %cst_29 : f32 to vector<2x32xf32>
    %59 = arith.addf %57, %58 : vector<2x32xf32>
    %60 = vector.extract_strided_slice %48 {offsets = [0, 32], sizes = [2, 32], strides = [1, 1]} : vector<2x128xf32> to vector<2x32xf32>
    %cst_30 = arith.constant 5.000000e-01 : f32
    %61 = vector.broadcast %cst_30 : f32 to vector<2x32xf32>
    %62 = arith.mulf %61, %60 : vector<2x32xf32>
    %cst_31 = arith.constant 5.000000e-01 : f32
    %63 = vector.broadcast %cst_31 : f32 to vector<2x32xf32>
    %64 = arith.addf %62, %63 : vector<2x32xf32>
    %65 = arith.mulf %64, %23 : vector<2x32xf32>
    %66 = arith.mulf %53, %54 : vector<2x32xf32>
    %67 = arith.addf %65, %66 : vector<2x32xf32>
    %68 = math.tanh %67 : vector<2x32xf32>
    %69 = arith.mulf %59, %68 : vector<2x32xf32>
    %c0_32 = arith.constant 0 : index
    %c0_33 = arith.constant 0 : index
    %70 = vector.load %arg4[%c0_32, %c0_33] : memref<32x128xf32, #tpu.memory_space<vmem>>, vector<32x128xf32>
    %cst_34 = arith.constant dense<0.000000e+00> : vector<2x128xf32>
    %71 = tpu.matmul %69, %70, %cst_34 {dimension_numbers = #tpu.dot_dimension_numbers<[1], [0], [0], [1], [0, 0, 1, 1], [], []>} : vector<2x32xf32>, vector<32x128xf32>, vector<2x128xf32> -> vector<2x128xf32>
    %72 = arith.addf %71, %9 : vector<2x128xf32>
    %c0_35 = arith.constant 0 : index
    %c0_36 = arith.constant 0 : index
    %73 = vector.load %arg5[%c0_35, %c0_36] : memref<32x128xf32, #tpu.memory_space<vmem>>, vector<32x128xf32>
    %cst_37 = arith.constant dense<0.000000e+00> : vector<2x128xf32>
    %74 = tpu.matmul %43, %73, %cst_37 {dimension_numbers = #tpu.dot_dimension_numbers<[1], [0], [0], [1], [0, 0, 1, 1], [], []>} : vector<2x32xf32>, vector<32x128xf32>, vector<2x128xf32> -> vector<2x128xf32>
    %75 = arith.addf %72, %74 : vector<2x128xf32>
    %76 = math.tanh %75 : vector<2x128xf32>
    %77 = vector.extract_strided_slice %76 {offsets = [0, 0], sizes = [2, 32], strides = [1, 1]} : vector<2x128xf32> to vector<2x32xf32>
    %cst_38 = arith.constant 5.000000e-01 : f32
    %78 = vector.broadcast %cst_38 : f32 to vector<2x32xf32>
    %79 = arith.mulf %78, %77 : vector<2x32xf32>
    %cst_39 = arith.constant 5.000000e-01 : f32
    %80 = vector.broadcast %cst_39 : f32 to vector<2x32xf32>
    %81 = arith.addf %79, %80 : vector<2x32xf32>
    %82 = vector.extract_strided_slice %76 {offsets = [0, 64], sizes = [2, 32], strides = [1, 1]} : vector<2x128xf32> to vector<2x32xf32>
    %83 = vector.extract_strided_slice %76 {offsets = [0, 96], sizes = [2, 32], strides = [1, 1]} : vector<2x128xf32> to vector<2x32xf32>
    %cst_40 = arith.constant 5.000000e-01 : f32
    %84 = vector.broadcast %cst_40 : f32 to vector<2x32xf32>
    %85 = arith.mulf %84, %83 : vector<2x32xf32>
    %cst_41 = arith.constant 5.000000e-01 : f32
    %86 = vector.broadcast %cst_41 : f32 to vector<2x32xf32>
    %87 = arith.addf %85, %86 : vector<2x32xf32>
    %88 = vector.extract_strided_slice %76 {offsets = [0, 32], sizes = [2, 32], strides = [1, 1]} : vector<2x128xf32> to vector<2x32xf32>
    %cst_42 = arith.constant 5.000000e-01 : f32
    %89 = vector.broadcast %cst_42 : f32 to vector<2x32xf32>
    %90 = arith.mulf %89, %88 : vector<2x32xf32>
    %cst_43 = arith.constant 5.000000e-01 : f32
    %91 = vector.broadcast %cst_43 : f32 to vector<2x32xf32>
    %92 = arith.addf %90, %91 : vector<2x32xf32>
    %93 = arith.mulf %92, %41 : vector<2x32xf32>
    %94 = arith.mulf %81, %82 : vector<2x32xf32>
    %95 = arith.addf %93, %94 : vector<2x32xf32>
    %96 = math.tanh %95 : vector<2x32xf32>
    %97 = arith.mulf %87, %96 : vector<2x32xf32>
    %c4 = arith.constant 4 : index
    %c0_44 = arith.constant 0 : index
    %98 = vector.load %arg10[%c4, %c0_44] : memref<16x128xf32, #tpu.memory_space<vmem>>, vector<2x128xf32>
    %c0_45 = arith.constant 0 : index
    %c0_46 = arith.constant 0 : index
    %99 = vector.load %arg2[%c0_45, %c0_46] : memref<32x128xf32, #tpu.memory_space<vmem>>, vector<32x128xf32>
    %cst_47 = arith.constant dense<0.000000e+00> : vector<2x128xf32>
    %100 = tpu.matmul %69, %99, %cst_47 {dimension_numbers = #tpu.dot_dimension_numbers<[1], [0], [0], [1], [0, 0, 1, 1], [], []>} : vector<2x32xf32>, vector<32x128xf32>, vector<2x128xf32> -> vector<2x128xf32>
    %101 = arith.addf %98, %100 : vector<2x128xf32>
    %102 = math.tanh %101 : vector<2x128xf32>
    %103 = vector.extract_strided_slice %102 {offsets = [0, 0], sizes = [2, 32], strides = [1, 1]} : vector<2x128xf32> to vector<2x32xf32>
    %cst_48 = arith.constant 5.000000e-01 : f32
    %104 = vector.broadcast %cst_48 : f32 to vector<2x32xf32>
    %105 = arith.mulf %104, %103 : vector<2x32xf32>
    %cst_49 = arith.constant 5.000000e-01 : f32
    %106 = vector.broadcast %cst_49 : f32 to vector<2x32xf32>
    %107 = arith.addf %105, %106 : vector<2x32xf32>
    %108 = vector.extract_strided_slice %102 {offsets = [0, 64], sizes = [2, 32], strides = [1, 1]} : vector<2x128xf32> to vector<2x32xf32>
    %109 = vector.extract_strided_slice %102 {offsets = [0, 96], sizes = [2, 32], strides = [1, 1]} : vector<2x128xf32> to vector<2x32xf32>
    %cst_50 = arith.constant 5.000000e-01 : f32
    %110 = vector.broadcast %cst_50 : f32 to vector<2x32xf32>
    %111 = arith.mulf %110, %109 : vector<2x32xf32>
    %cst_51 = arith.constant 5.000000e-01 : f32
    %112 = vector.broadcast %cst_51 : f32 to vector<2x32xf32>
    %113 = arith.addf %111, %112 : vector<2x32xf32>
    %114 = vector.extract_strided_slice %102 {offsets = [0, 32], sizes = [2, 32], strides = [1, 1]} : vector<2x128xf32> to vector<2x32xf32>
    %cst_52 = arith.constant 5.000000e-01 : f32
    %115 = vector.broadcast %cst_52 : f32 to vector<2x32xf32>
    %116 = arith.mulf %115, %114 : vector<2x32xf32>
    %cst_53 = arith.constant 5.000000e-01 : f32
    %117 = vector.broadcast %cst_53 : f32 to vector<2x32xf32>
    %118 = arith.addf %116, %117 : vector<2x32xf32>
    %119 = arith.mulf %118, %67 : vector<2x32xf32>
    %120 = arith.mulf %107, %108 : vector<2x32xf32>
    %121 = arith.addf %119, %120 : vector<2x32xf32>
    %122 = math.tanh %121 : vector<2x32xf32>
    %123 = arith.mulf %113, %122 : vector<2x32xf32>
    %c0_54 = arith.constant 0 : index
    %c0_55 = arith.constant 0 : index
    %124 = vector.load %arg4[%c0_54, %c0_55] : memref<32x128xf32, #tpu.memory_space<vmem>>, vector<32x128xf32>
    %cst_56 = arith.constant dense<0.000000e+00> : vector<2x128xf32>
    %125 = tpu.matmul %123, %124, %cst_56 {dimension_numbers = #tpu.dot_dimension_numbers<[1], [0], [0], [1], [0, 0, 1, 1], [], []>} : vector<2x32xf32>, vector<32x128xf32>, vector<2x128xf32> -> vector<2x128xf32>
    %126 = arith.addf %125, %9 : vector<2x128xf32>
    %c0_57 = arith.constant 0 : index
    %c0_58 = arith.constant 0 : index
    %127 = vector.load %arg5[%c0_57, %c0_58] : memref<32x128xf32, #tpu.memory_space<vmem>>, vector<32x128xf32>
    %cst_59 = arith.constant dense<0.000000e+00> : vector<2x128xf32>
    %128 = tpu.matmul %97, %127, %cst_59 {dimension_numbers = #tpu.dot_dimension_numbers<[1], [0], [0], [1], [0, 0, 1, 1], [], []>} : vector<2x32xf32>, vector<32x128xf32>, vector<2x128xf32> -> vector<2x128xf32>
    %129 = arith.addf %126, %128 : vector<2x128xf32>
    %130 = math.tanh %129 : vector<2x128xf32>
    %131 = vector.extract_strided_slice %130 {offsets = [0, 0], sizes = [2, 32], strides = [1, 1]} : vector<2x128xf32> to vector<2x32xf32>
    %cst_60 = arith.constant 5.000000e-01 : f32
    %132 = vector.broadcast %cst_60 : f32 to vector<2x32xf32>
    %133 = arith.mulf %132, %131 : vector<2x32xf32>
    %cst_61 = arith.constant 5.000000e-01 : f32
    %134 = vector.broadcast %cst_61 : f32 to vector<2x32xf32>
    %135 = arith.addf %133, %134 : vector<2x32xf32>
    %136 = vector.extract_strided_slice %130 {offsets = [0, 64], sizes = [2, 32], strides = [1, 1]} : vector<2x128xf32> to vector<2x32xf32>
    %137 = vector.extract_strided_slice %130 {offsets = [0, 96], sizes = [2, 32], strides = [1, 1]} : vector<2x128xf32> to vector<2x32xf32>
    %cst_62 = arith.constant 5.000000e-01 : f32
    %138 = vector.broadcast %cst_62 : f32 to vector<2x32xf32>
    %139 = arith.mulf %138, %137 : vector<2x32xf32>
    %cst_63 = arith.constant 5.000000e-01 : f32
    %140 = vector.broadcast %cst_63 : f32 to vector<2x32xf32>
    %141 = arith.addf %139, %140 : vector<2x32xf32>
    %142 = vector.extract_strided_slice %130 {offsets = [0, 32], sizes = [2, 32], strides = [1, 1]} : vector<2x128xf32> to vector<2x32xf32>
    %cst_64 = arith.constant 5.000000e-01 : f32
    %143 = vector.broadcast %cst_64 : f32 to vector<2x32xf32>
    %144 = arith.mulf %143, %142 : vector<2x32xf32>
    %cst_65 = arith.constant 5.000000e-01 : f32
    %145 = vector.broadcast %cst_65 : f32 to vector<2x32xf32>
    %146 = arith.addf %144, %145 : vector<2x32xf32>
    %147 = arith.mulf %146, %95 : vector<2x32xf32>
    %148 = arith.mulf %135, %136 : vector<2x32xf32>
    %149 = arith.addf %147, %148 : vector<2x32xf32>
    %150 = math.tanh %149 : vector<2x32xf32>
    %151 = arith.mulf %141, %150 : vector<2x32xf32>
    %c6 = arith.constant 6 : index
    %c0_66 = arith.constant 0 : index
    %152 = vector.load %arg10[%c6, %c0_66] : memref<16x128xf32, #tpu.memory_space<vmem>>, vector<2x128xf32>
    %c0_67 = arith.constant 0 : index
    %c0_68 = arith.constant 0 : index
    %153 = vector.load %arg2[%c0_67, %c0_68] : memref<32x128xf32, #tpu.memory_space<vmem>>, vector<32x128xf32>
    %cst_69 = arith.constant dense<0.000000e+00> : vector<2x128xf32>
    %154 = tpu.matmul %123, %153, %cst_69 {dimension_numbers = #tpu.dot_dimension_numbers<[1], [0], [0], [1], [0, 0, 1, 1], [], []>} : vector<2x32xf32>, vector<32x128xf32>, vector<2x128xf32> -> vector<2x128xf32>
    %155 = arith.addf %152, %154 : vector<2x128xf32>
    %156 = math.tanh %155 : vector<2x128xf32>
    %157 = vector.extract_strided_slice %156 {offsets = [0, 0], sizes = [2, 32], strides = [1, 1]} : vector<2x128xf32> to vector<2x32xf32>
    %cst_70 = arith.constant 5.000000e-01 : f32
    %158 = vector.broadcast %cst_70 : f32 to vector<2x32xf32>
    %159 = arith.mulf %158, %157 : vector<2x32xf32>
    %cst_71 = arith.constant 5.000000e-01 : f32
    %160 = vector.broadcast %cst_71 : f32 to vector<2x32xf32>
    %161 = arith.addf %159, %160 : vector<2x32xf32>
    %162 = vector.extract_strided_slice %156 {offsets = [0, 64], sizes = [2, 32], strides = [1, 1]} : vector<2x128xf32> to vector<2x32xf32>
    %163 = vector.extract_strided_slice %156 {offsets = [0, 96], sizes = [2, 32], strides = [1, 1]} : vector<2x128xf32> to vector<2x32xf32>
    %cst_72 = arith.constant 5.000000e-01 : f32
    %164 = vector.broadcast %cst_72 : f32 to vector<2x32xf32>
    %165 = arith.mulf %164, %163 : vector<2x32xf32>
    %cst_73 = arith.constant 5.000000e-01 : f32
    %166 = vector.broadcast %cst_73 : f32 to vector<2x32xf32>
    %167 = arith.addf %165, %166 : vector<2x32xf32>
    %168 = vector.extract_strided_slice %156 {offsets = [0, 32], sizes = [2, 32], strides = [1, 1]} : vector<2x128xf32> to vector<2x32xf32>
    %cst_74 = arith.constant 5.000000e-01 : f32
    %169 = vector.broadcast %cst_74 : f32 to vector<2x32xf32>
    %170 = arith.mulf %169, %168 : vector<2x32xf32>
    %cst_75 = arith.constant 5.000000e-01 : f32
    %171 = vector.broadcast %cst_75 : f32 to vector<2x32xf32>
    %172 = arith.addf %170, %171 : vector<2x32xf32>
    %173 = arith.mulf %172, %121 : vector<2x32xf32>
    %174 = arith.mulf %161, %162 : vector<2x32xf32>
    %175 = arith.addf %173, %174 : vector<2x32xf32>
    %176 = math.tanh %175 : vector<2x32xf32>
    %177 = arith.mulf %167, %176 : vector<2x32xf32>
    %c0_76 = arith.constant 0 : index
    %c0_77 = arith.constant 0 : index
    %178 = vector.load %arg4[%c0_76, %c0_77] : memref<32x128xf32, #tpu.memory_space<vmem>>, vector<32x128xf32>
    %cst_78 = arith.constant dense<0.000000e+00> : vector<2x128xf32>
    %179 = tpu.matmul %177, %178, %cst_78 {dimension_numbers = #tpu.dot_dimension_numbers<[1], [0], [0], [1], [0, 0, 1, 1], [], []>} : vector<2x32xf32>, vector<32x128xf32>, vector<2x128xf32> -> vector<2x128xf32>
    %180 = arith.addf %179, %9 : vector<2x128xf32>
    %c0_79 = arith.constant 0 : index
    %c0_80 = arith.constant 0 : index
    %181 = vector.load %arg5[%c0_79, %c0_80] : memref<32x128xf32, #tpu.memory_space<vmem>>, vector<32x128xf32>
    %cst_81 = arith.constant dense<0.000000e+00> : vector<2x128xf32>
    %182 = tpu.matmul %151, %181, %cst_81 {dimension_numbers = #tpu.dot_dimension_numbers<[1], [0], [0], [1], [0, 0, 1, 1], [], []>} : vector<2x32xf32>, vector<32x128xf32>, vector<2x128xf32> -> vector<2x128xf32>
    %183 = arith.addf %180, %182 : vector<2x128xf32>
    %184 = math.tanh %183 : vector<2x128xf32>
    %185 = vector.extract_strided_slice %184 {offsets = [0, 0], sizes = [2, 32], strides = [1, 1]} : vector<2x128xf32> to vector<2x32xf32>
    %cst_82 = arith.constant 5.000000e-01 : f32
    %186 = vector.broadcast %cst_82 : f32 to vector<2x32xf32>
    %187 = arith.mulf %186, %185 : vector<2x32xf32>
    %cst_83 = arith.constant 5.000000e-01 : f32
    %188 = vector.broadcast %cst_83 : f32 to vector<2x32xf32>
    %189 = arith.addf %187, %188 : vector<2x32xf32>
    %190 = vector.extract_strided_slice %184 {offsets = [0, 64], sizes = [2, 32], strides = [1, 1]} : vector<2x128xf32> to vector<2x32xf32>
    %191 = vector.extract_strided_slice %184 {offsets = [0, 96], sizes = [2, 32], strides = [1, 1]} : vector<2x128xf32> to vector<2x32xf32>
    %cst_84 = arith.constant 5.000000e-01 : f32
    %192 = vector.broadcast %cst_84 : f32 to vector<2x32xf32>
    %193 = arith.mulf %192, %191 : vector<2x32xf32>
    %cst_85 = arith.constant 5.000000e-01 : f32
    %194 = vector.broadcast %cst_85 : f32 to vector<2x32xf32>
    %195 = arith.addf %193, %194 : vector<2x32xf32>
    %196 = vector.extract_strided_slice %184 {offsets = [0, 32], sizes = [2, 32], strides = [1, 1]} : vector<2x128xf32> to vector<2x32xf32>
    %cst_86 = arith.constant 5.000000e-01 : f32
    %197 = vector.broadcast %cst_86 : f32 to vector<2x32xf32>
    %198 = arith.mulf %197, %196 : vector<2x32xf32>
    %cst_87 = arith.constant 5.000000e-01 : f32
    %199 = vector.broadcast %cst_87 : f32 to vector<2x32xf32>
    %200 = arith.addf %198, %199 : vector<2x32xf32>
    %201 = arith.mulf %200, %149 : vector<2x32xf32>
    %202 = arith.mulf %189, %190 : vector<2x32xf32>
    %203 = arith.addf %201, %202 : vector<2x32xf32>
    %204 = math.tanh %203 : vector<2x32xf32>
    %205 = arith.mulf %195, %204 : vector<2x32xf32>
    %c8 = arith.constant 8 : index
    %c0_88 = arith.constant 0 : index
    %206 = vector.load %arg10[%c8, %c0_88] : memref<16x128xf32, #tpu.memory_space<vmem>>, vector<2x128xf32>
    %c0_89 = arith.constant 0 : index
    %c0_90 = arith.constant 0 : index
    %207 = vector.load %arg2[%c0_89, %c0_90] : memref<32x128xf32, #tpu.memory_space<vmem>>, vector<32x128xf32>
    %cst_91 = arith.constant dense<0.000000e+00> : vector<2x128xf32>
    %208 = tpu.matmul %177, %207, %cst_91 {dimension_numbers = #tpu.dot_dimension_numbers<[1], [0], [0], [1], [0, 0, 1, 1], [], []>} : vector<2x32xf32>, vector<32x128xf32>, vector<2x128xf32> -> vector<2x128xf32>
    %209 = arith.addf %206, %208 : vector<2x128xf32>
    %210 = math.tanh %209 : vector<2x128xf32>
    %211 = vector.extract_strided_slice %210 {offsets = [0, 0], sizes = [2, 32], strides = [1, 1]} : vector<2x128xf32> to vector<2x32xf32>
    %cst_92 = arith.constant 5.000000e-01 : f32
    %212 = vector.broadcast %cst_92 : f32 to vector<2x32xf32>
    %213 = arith.mulf %212, %211 : vector<2x32xf32>
    %cst_93 = arith.constant 5.000000e-01 : f32
    %214 = vector.broadcast %cst_93 : f32 to vector<2x32xf32>
    %215 = arith.addf %213, %214 : vector<2x32xf32>
    %216 = vector.extract_strided_slice %210 {offsets = [0, 64], sizes = [2, 32], strides = [1, 1]} : vector<2x128xf32> to vector<2x32xf32>
    %217 = vector.extract_strided_slice %210 {offsets = [0, 96], sizes = [2, 32], strides = [1, 1]} : vector<2x128xf32> to vector<2x32xf32>
    %cst_94 = arith.constant 5.000000e-01 : f32
    %218 = vector.broadcast %cst_94 : f32 to vector<2x32xf32>
    %219 = arith.mulf %218, %217 : vector<2x32xf32>
    %cst_95 = arith.constant 5.000000e-01 : f32
    %220 = vector.broadcast %cst_95 : f32 to vector<2x32xf32>
    %221 = arith.addf %219, %220 : vector<2x32xf32>
    %222 = vector.extract_strided_slice %210 {offsets = [0, 32], sizes = [2, 32], strides = [1, 1]} : vector<2x128xf32> to vector<2x32xf32>
    %cst_96 = arith.constant 5.000000e-01 : f32
    %223 = vector.broadcast %cst_96 : f32 to vector<2x32xf32>
    %224 = arith.mulf %223, %222 : vector<2x32xf32>
    %cst_97 = arith.constant 5.000000e-01 : f32
    %225 = vector.broadcast %cst_97 : f32 to vector<2x32xf32>
    %226 = arith.addf %224, %225 : vector<2x32xf32>
    %227 = arith.mulf %226, %175 : vector<2x32xf32>
    %228 = arith.mulf %215, %216 : vector<2x32xf32>
    %229 = arith.addf %227, %228 : vector<2x32xf32>
    %230 = math.tanh %229 : vector<2x32xf32>
    %231 = arith.mulf %221, %230 : vector<2x32xf32>
    %c0_98 = arith.constant 0 : index
    %c0_99 = arith.constant 0 : index
    %232 = vector.load %arg4[%c0_98, %c0_99] : memref<32x128xf32, #tpu.memory_space<vmem>>, vector<32x128xf32>
    %cst_100 = arith.constant dense<0.000000e+00> : vector<2x128xf32>
    %233 = tpu.matmul %231, %232, %cst_100 {dimension_numbers = #tpu.dot_dimension_numbers<[1], [0], [0], [1], [0, 0, 1, 1], [], []>} : vector<2x32xf32>, vector<32x128xf32>, vector<2x128xf32> -> vector<2x128xf32>
    %234 = arith.addf %233, %9 : vector<2x128xf32>
    %c0_101 = arith.constant 0 : index
    %c0_102 = arith.constant 0 : index
    %235 = vector.load %arg5[%c0_101, %c0_102] : memref<32x128xf32, #tpu.memory_space<vmem>>, vector<32x128xf32>
    %cst_103 = arith.constant dense<0.000000e+00> : vector<2x128xf32>
    %236 = tpu.matmul %205, %235, %cst_103 {dimension_numbers = #tpu.dot_dimension_numbers<[1], [0], [0], [1], [0, 0, 1, 1], [], []>} : vector<2x32xf32>, vector<32x128xf32>, vector<2x128xf32> -> vector<2x128xf32>
    %237 = arith.addf %234, %236 : vector<2x128xf32>
    %238 = math.tanh %237 : vector<2x128xf32>
    %239 = vector.extract_strided_slice %238 {offsets = [0, 0], sizes = [2, 32], strides = [1, 1]} : vector<2x128xf32> to vector<2x32xf32>
    %cst_104 = arith.constant 5.000000e-01 : f32
    %240 = vector.broadcast %cst_104 : f32 to vector<2x32xf32>
    %241 = arith.mulf %240, %239 : vector<2x32xf32>
    %cst_105 = arith.constant 5.000000e-01 : f32
    %242 = vector.broadcast %cst_105 : f32 to vector<2x32xf32>
    %243 = arith.addf %241, %242 : vector<2x32xf32>
    %244 = vector.extract_strided_slice %238 {offsets = [0, 64], sizes = [2, 32], strides = [1, 1]} : vector<2x128xf32> to vector<2x32xf32>
    %245 = vector.extract_strided_slice %238 {offsets = [0, 96], sizes = [2, 32], strides = [1, 1]} : vector<2x128xf32> to vector<2x32xf32>
    %cst_106 = arith.constant 5.000000e-01 : f32
    %246 = vector.broadcast %cst_106 : f32 to vector<2x32xf32>
    %247 = arith.mulf %246, %245 : vector<2x32xf32>
    %cst_107 = arith.constant 5.000000e-01 : f32
    %248 = vector.broadcast %cst_107 : f32 to vector<2x32xf32>
    %249 = arith.addf %247, %248 : vector<2x32xf32>
    %250 = vector.extract_strided_slice %238 {offsets = [0, 32], sizes = [2, 32], strides = [1, 1]} : vector<2x128xf32> to vector<2x32xf32>
    %cst_108 = arith.constant 5.000000e-01 : f32
    %251 = vector.broadcast %cst_108 : f32 to vector<2x32xf32>
    %252 = arith.mulf %251, %250 : vector<2x32xf32>
    %cst_109 = arith.constant 5.000000e-01 : f32
    %253 = vector.broadcast %cst_109 : f32 to vector<2x32xf32>
    %254 = arith.addf %252, %253 : vector<2x32xf32>
    %255 = arith.mulf %254, %203 : vector<2x32xf32>
    %256 = arith.mulf %243, %244 : vector<2x32xf32>
    %257 = arith.addf %255, %256 : vector<2x32xf32>
    %258 = math.tanh %257 : vector<2x32xf32>
    %259 = arith.mulf %249, %258 : vector<2x32xf32>
    %c10 = arith.constant 10 : index
    %c0_110 = arith.constant 0 : index
    %260 = vector.load %arg10[%c10, %c0_110] : memref<16x128xf32, #tpu.memory_space<vmem>>, vector<2x128xf32>
    %c0_111 = arith.constant 0 : index
    %c0_112 = arith.constant 0 : index
    %261 = vector.load %arg2[%c0_111, %c0_112] : memref<32x128xf32, #tpu.memory_space<vmem>>, vector<32x128xf32>
    %cst_113 = arith.constant dense<0.000000e+00> : vector<2x128xf32>
    %262 = tpu.matmul %231, %261, %cst_113 {dimension_numbers = #tpu.dot_dimension_numbers<[1], [0], [0], [1], [0, 0, 1, 1], [], []>} : vector<2x32xf32>, vector<32x128xf32>, vector<2x128xf32> -> vector<2x128xf32>
    %263 = arith.addf %260, %262 : vector<2x128xf32>
    %264 = math.tanh %263 : vector<2x128xf32>
    %265 = vector.extract_strided_slice %264 {offsets = [0, 0], sizes = [2, 32], strides = [1, 1]} : vector<2x128xf32> to vector<2x32xf32>
    %cst_114 = arith.constant 5.000000e-01 : f32
    %266 = vector.broadcast %cst_114 : f32 to vector<2x32xf32>
    %267 = arith.mulf %266, %265 : vector<2x32xf32>
    %cst_115 = arith.constant 5.000000e-01 : f32
    %268 = vector.broadcast %cst_115 : f32 to vector<2x32xf32>
    %269 = arith.addf %267, %268 : vector<2x32xf32>
    %270 = vector.extract_strided_slice %264 {offsets = [0, 64], sizes = [2, 32], strides = [1, 1]} : vector<2x128xf32> to vector<2x32xf32>
    %271 = vector.extract_strided_slice %264 {offsets = [0, 96], sizes = [2, 32], strides = [1, 1]} : vector<2x128xf32> to vector<2x32xf32>
    %cst_116 = arith.constant 5.000000e-01 : f32
    %272 = vector.broadcast %cst_116 : f32 to vector<2x32xf32>
    %273 = arith.mulf %272, %271 : vector<2x32xf32>
    %cst_117 = arith.constant 5.000000e-01 : f32
    %274 = vector.broadcast %cst_117 : f32 to vector<2x32xf32>
    %275 = arith.addf %273, %274 : vector<2x32xf32>
    %276 = vector.extract_strided_slice %264 {offsets = [0, 32], sizes = [2, 32], strides = [1, 1]} : vector<2x128xf32> to vector<2x32xf32>
    %cst_118 = arith.constant 5.000000e-01 : f32
    %277 = vector.broadcast %cst_118 : f32 to vector<2x32xf32>
    %278 = arith.mulf %277, %276 : vector<2x32xf32>
    %cst_119 = arith.constant 5.000000e-01 : f32
    %279 = vector.broadcast %cst_119 : f32 to vector<2x32xf32>
    %280 = arith.addf %278, %279 : vector<2x32xf32>
    %281 = arith.mulf %280, %229 : vector<2x32xf32>
    %282 = arith.mulf %269, %270 : vector<2x32xf32>
    %283 = arith.addf %281, %282 : vector<2x32xf32>
    %284 = math.tanh %283 : vector<2x32xf32>
    %285 = arith.mulf %275, %284 : vector<2x32xf32>
    %c0_120 = arith.constant 0 : index
    %c0_121 = arith.constant 0 : index
    %286 = vector.load %arg4[%c0_120, %c0_121] : memref<32x128xf32, #tpu.memory_space<vmem>>, vector<32x128xf32>
    %cst_122 = arith.constant dense<0.000000e+00> : vector<2x128xf32>
    %287 = tpu.matmul %285, %286, %cst_122 {dimension_numbers = #tpu.dot_dimension_numbers<[1], [0], [0], [1], [0, 0, 1, 1], [], []>} : vector<2x32xf32>, vector<32x128xf32>, vector<2x128xf32> -> vector<2x128xf32>
    %288 = arith.addf %287, %9 : vector<2x128xf32>
    %c0_123 = arith.constant 0 : index
    %c0_124 = arith.constant 0 : index
    %289 = vector.load %arg5[%c0_123, %c0_124] : memref<32x128xf32, #tpu.memory_space<vmem>>, vector<32x128xf32>
    %cst_125 = arith.constant dense<0.000000e+00> : vector<2x128xf32>
    %290 = tpu.matmul %259, %289, %cst_125 {dimension_numbers = #tpu.dot_dimension_numbers<[1], [0], [0], [1], [0, 0, 1, 1], [], []>} : vector<2x32xf32>, vector<32x128xf32>, vector<2x128xf32> -> vector<2x128xf32>
    %291 = arith.addf %288, %290 : vector<2x128xf32>
    %292 = math.tanh %291 : vector<2x128xf32>
    %293 = vector.extract_strided_slice %292 {offsets = [0, 0], sizes = [2, 32], strides = [1, 1]} : vector<2x128xf32> to vector<2x32xf32>
    %cst_126 = arith.constant 5.000000e-01 : f32
    %294 = vector.broadcast %cst_126 : f32 to vector<2x32xf32>
    %295 = arith.mulf %294, %293 : vector<2x32xf32>
    %cst_127 = arith.constant 5.000000e-01 : f32
    %296 = vector.broadcast %cst_127 : f32 to vector<2x32xf32>
    %297 = arith.addf %295, %296 : vector<2x32xf32>
    %298 = vector.extract_strided_slice %292 {offsets = [0, 64], sizes = [2, 32], strides = [1, 1]} : vector<2x128xf32> to vector<2x32xf32>
    %299 = vector.extract_strided_slice %292 {offsets = [0, 96], sizes = [2, 32], strides = [1, 1]} : vector<2x128xf32> to vector<2x32xf32>
    %cst_128 = arith.constant 5.000000e-01 : f32
    %300 = vector.broadcast %cst_128 : f32 to vector<2x32xf32>
    %301 = arith.mulf %300, %299 : vector<2x32xf32>
    %cst_129 = arith.constant 5.000000e-01 : f32
    %302 = vector.broadcast %cst_129 : f32 to vector<2x32xf32>
    %303 = arith.addf %301, %302 : vector<2x32xf32>
    %304 = vector.extract_strided_slice %292 {offsets = [0, 32], sizes = [2, 32], strides = [1, 1]} : vector<2x128xf32> to vector<2x32xf32>
    %cst_130 = arith.constant 5.000000e-01 : f32
    %305 = vector.broadcast %cst_130 : f32 to vector<2x32xf32>
    %306 = arith.mulf %305, %304 : vector<2x32xf32>
    %cst_131 = arith.constant 5.000000e-01 : f32
    %307 = vector.broadcast %cst_131 : f32 to vector<2x32xf32>
    %308 = arith.addf %306, %307 : vector<2x32xf32>
    %309 = arith.mulf %308, %257 : vector<2x32xf32>
    %310 = arith.mulf %297, %298 : vector<2x32xf32>
    %311 = arith.addf %309, %310 : vector<2x32xf32>
    %312 = math.tanh %311 : vector<2x32xf32>
    %313 = arith.mulf %303, %312 : vector<2x32xf32>
    %c12 = arith.constant 12 : index
    %c0_132 = arith.constant 0 : index
    %314 = vector.load %arg10[%c12, %c0_132] : memref<16x128xf32, #tpu.memory_space<vmem>>, vector<2x128xf32>
    %c0_133 = arith.constant 0 : index
    %c0_134 = arith.constant 0 : index
    %315 = vector.load %arg2[%c0_133, %c0_134] : memref<32x128xf32, #tpu.memory_space<vmem>>, vector<32x128xf32>
    %cst_135 = arith.constant dense<0.000000e+00> : vector<2x128xf32>
    %316 = tpu.matmul %285, %315, %cst_135 {dimension_numbers = #tpu.dot_dimension_numbers<[1], [0], [0], [1], [0, 0, 1, 1], [], []>} : vector<2x32xf32>, vector<32x128xf32>, vector<2x128xf32> -> vector<2x128xf32>
    %317 = arith.addf %314, %316 : vector<2x128xf32>
    %318 = math.tanh %317 : vector<2x128xf32>
    %319 = vector.extract_strided_slice %318 {offsets = [0, 0], sizes = [2, 32], strides = [1, 1]} : vector<2x128xf32> to vector<2x32xf32>
    %cst_136 = arith.constant 5.000000e-01 : f32
    %320 = vector.broadcast %cst_136 : f32 to vector<2x32xf32>
    %321 = arith.mulf %320, %319 : vector<2x32xf32>
    %cst_137 = arith.constant 5.000000e-01 : f32
    %322 = vector.broadcast %cst_137 : f32 to vector<2x32xf32>
    %323 = arith.addf %321, %322 : vector<2x32xf32>
    %324 = vector.extract_strided_slice %318 {offsets = [0, 64], sizes = [2, 32], strides = [1, 1]} : vector<2x128xf32> to vector<2x32xf32>
    %325 = vector.extract_strided_slice %318 {offsets = [0, 96], sizes = [2, 32], strides = [1, 1]} : vector<2x128xf32> to vector<2x32xf32>
    %cst_138 = arith.constant 5.000000e-01 : f32
    %326 = vector.broadcast %cst_138 : f32 to vector<2x32xf32>
    %327 = arith.mulf %326, %325 : vector<2x32xf32>
    %cst_139 = arith.constant 5.000000e-01 : f32
    %328 = vector.broadcast %cst_139 : f32 to vector<2x32xf32>
    %329 = arith.addf %327, %328 : vector<2x32xf32>
    %330 = vector.extract_strided_slice %318 {offsets = [0, 32], sizes = [2, 32], strides = [1, 1]} : vector<2x128xf32> to vector<2x32xf32>
    %cst_140 = arith.constant 5.000000e-01 : f32
    %331 = vector.broadcast %cst_140 : f32 to vector<2x32xf32>
    %332 = arith.mulf %331, %330 : vector<2x32xf32>
    %cst_141 = arith.constant 5.000000e-01 : f32
    %333 = vector.broadcast %cst_141 : f32 to vector<2x32xf32>
    %334 = arith.addf %332, %333 : vector<2x32xf32>
    %335 = arith.mulf %334, %283 : vector<2x32xf32>
    %336 = arith.mulf %323, %324 : vector<2x32xf32>
    %337 = arith.addf %335, %336 : vector<2x32xf32>
    %338 = math.tanh %337 : vector<2x32xf32>
    %339 = arith.mulf %329, %338 : vector<2x32xf32>
    %c0_142 = arith.constant 0 : index
    %c0_143 = arith.constant 0 : index
    %340 = vector.load %arg4[%c0_142, %c0_143] : memref<32x128xf32, #tpu.memory_space<vmem>>, vector<32x128xf32>
    %cst_144 = arith.constant dense<0.000000e+00> : vector<2x128xf32>
    %341 = tpu.matmul %339, %340, %cst_144 {dimension_numbers = #tpu.dot_dimension_numbers<[1], [0], [0], [1], [0, 0, 1, 1], [], []>} : vector<2x32xf32>, vector<32x128xf32>, vector<2x128xf32> -> vector<2x128xf32>
    %342 = arith.addf %341, %9 : vector<2x128xf32>
    %c0_145 = arith.constant 0 : index
    %c0_146 = arith.constant 0 : index
    %343 = vector.load %arg5[%c0_145, %c0_146] : memref<32x128xf32, #tpu.memory_space<vmem>>, vector<32x128xf32>
    %cst_147 = arith.constant dense<0.000000e+00> : vector<2x128xf32>
    %344 = tpu.matmul %313, %343, %cst_147 {dimension_numbers = #tpu.dot_dimension_numbers<[1], [0], [0], [1], [0, 0, 1, 1], [], []>} : vector<2x32xf32>, vector<32x128xf32>, vector<2x128xf32> -> vector<2x128xf32>
    %345 = arith.addf %342, %344 : vector<2x128xf32>
    %346 = math.tanh %345 : vector<2x128xf32>
    %347 = vector.extract_strided_slice %346 {offsets = [0, 0], sizes = [2, 32], strides = [1, 1]} : vector<2x128xf32> to vector<2x32xf32>
    %cst_148 = arith.constant 5.000000e-01 : f32
    %348 = vector.broadcast %cst_148 : f32 to vector<2x32xf32>
    %349 = arith.mulf %348, %347 : vector<2x32xf32>
    %cst_149 = arith.constant 5.000000e-01 : f32
    %350 = vector.broadcast %cst_149 : f32 to vector<2x32xf32>
    %351 = arith.addf %349, %350 : vector<2x32xf32>
    %352 = vector.extract_strided_slice %346 {offsets = [0, 64], sizes = [2, 32], strides = [1, 1]} : vector<2x128xf32> to vector<2x32xf32>
    %353 = vector.extract_strided_slice %346 {offsets = [0, 96], sizes = [2, 32], strides = [1, 1]} : vector<2x128xf32> to vector<2x32xf32>
    %cst_150 = arith.constant 5.000000e-01 : f32
    %354 = vector.broadcast %cst_150 : f32 to vector<2x32xf32>
    %355 = arith.mulf %354, %353 : vector<2x32xf32>
    %cst_151 = arith.constant 5.000000e-01 : f32
    %356 = vector.broadcast %cst_151 : f32 to vector<2x32xf32>
    %357 = arith.addf %355, %356 : vector<2x32xf32>
    %358 = vector.extract_strided_slice %346 {offsets = [0, 32], sizes = [2, 32], strides = [1, 1]} : vector<2x128xf32> to vector<2x32xf32>
    %cst_152 = arith.constant 5.000000e-01 : f32
    %359 = vector.broadcast %cst_152 : f32 to vector<2x32xf32>
    %360 = arith.mulf %359, %358 : vector<2x32xf32>
    %cst_153 = arith.constant 5.000000e-01 : f32
    %361 = vector.broadcast %cst_153 : f32 to vector<2x32xf32>
    %362 = arith.addf %360, %361 : vector<2x32xf32>
    %363 = arith.mulf %362, %311 : vector<2x32xf32>
    %364 = arith.mulf %351, %352 : vector<2x32xf32>
    %365 = arith.addf %363, %364 : vector<2x32xf32>
    %366 = math.tanh %365 : vector<2x32xf32>
    %367 = arith.mulf %357, %366 : vector<2x32xf32>
    %c14 = arith.constant 14 : index
    %c0_154 = arith.constant 0 : index
    %368 = vector.load %arg10[%c14, %c0_154] : memref<16x128xf32, #tpu.memory_space<vmem>>, vector<2x128xf32>
    %c0_155 = arith.constant 0 : index
    %c0_156 = arith.constant 0 : index
    %369 = vector.load %arg2[%c0_155, %c0_156] : memref<32x128xf32, #tpu.memory_space<vmem>>, vector<32x128xf32>
    %cst_157 = arith.constant dense<0.000000e+00> : vector<2x128xf32>
    %370 = tpu.matmul %339, %369, %cst_157 {dimension_numbers = #tpu.dot_dimension_numbers<[1], [0], [0], [1], [0, 0, 1, 1], [], []>} : vector<2x32xf32>, vector<32x128xf32>, vector<2x128xf32> -> vector<2x128xf32>
    %371 = arith.addf %368, %370 : vector<2x128xf32>
    %372 = math.tanh %371 : vector<2x128xf32>
    %373 = vector.extract_strided_slice %372 {offsets = [0, 0], sizes = [2, 32], strides = [1, 1]} : vector<2x128xf32> to vector<2x32xf32>
    %cst_158 = arith.constant 5.000000e-01 : f32
    %374 = vector.broadcast %cst_158 : f32 to vector<2x32xf32>
    %375 = arith.mulf %374, %373 : vector<2x32xf32>
    %cst_159 = arith.constant 5.000000e-01 : f32
    %376 = vector.broadcast %cst_159 : f32 to vector<2x32xf32>
    %377 = arith.addf %375, %376 : vector<2x32xf32>
    %378 = vector.extract_strided_slice %372 {offsets = [0, 64], sizes = [2, 32], strides = [1, 1]} : vector<2x128xf32> to vector<2x32xf32>
    %379 = vector.extract_strided_slice %372 {offsets = [0, 96], sizes = [2, 32], strides = [1, 1]} : vector<2x128xf32> to vector<2x32xf32>
    %cst_160 = arith.constant 5.000000e-01 : f32
    %380 = vector.broadcast %cst_160 : f32 to vector<2x32xf32>
    %381 = arith.mulf %380, %379 : vector<2x32xf32>
    %cst_161 = arith.constant 5.000000e-01 : f32
    %382 = vector.broadcast %cst_161 : f32 to vector<2x32xf32>
    %383 = arith.addf %381, %382 : vector<2x32xf32>
    %384 = vector.extract_strided_slice %372 {offsets = [0, 32], sizes = [2, 32], strides = [1, 1]} : vector<2x128xf32> to vector<2x32xf32>
    %cst_162 = arith.constant 5.000000e-01 : f32
    %385 = vector.broadcast %cst_162 : f32 to vector<2x32xf32>
    %386 = arith.mulf %385, %384 : vector<2x32xf32>
    %cst_163 = arith.constant 5.000000e-01 : f32
    %387 = vector.broadcast %cst_163 : f32 to vector<2x32xf32>
    %388 = arith.addf %386, %387 : vector<2x32xf32>
    %389 = arith.mulf %388, %337 : vector<2x32xf32>
    %390 = arith.mulf %377, %378 : vector<2x32xf32>
    %391 = arith.addf %389, %390 : vector<2x32xf32>
    %392 = math.tanh %391 : vector<2x32xf32>
    %393 = arith.mulf %383, %392 : vector<2x32xf32>
    %c0_164 = arith.constant 0 : index
    %c0_165 = arith.constant 0 : index
    %394 = vector.load %arg4[%c0_164, %c0_165] : memref<32x128xf32, #tpu.memory_space<vmem>>, vector<32x128xf32>
    %cst_166 = arith.constant dense<0.000000e+00> : vector<2x128xf32>
    %395 = tpu.matmul %393, %394, %cst_166 {dimension_numbers = #tpu.dot_dimension_numbers<[1], [0], [0], [1], [0, 0, 1, 1], [], []>} : vector<2x32xf32>, vector<32x128xf32>, vector<2x128xf32> -> vector<2x128xf32>
    %396 = arith.addf %395, %9 : vector<2x128xf32>
    %c0_167 = arith.constant 0 : index
    %c0_168 = arith.constant 0 : index
    %397 = vector.load %arg5[%c0_167, %c0_168] : memref<32x128xf32, #tpu.memory_space<vmem>>, vector<32x128xf32>
    %cst_169 = arith.constant dense<0.000000e+00> : vector<2x128xf32>
    %398 = tpu.matmul %367, %397, %cst_169 {dimension_numbers = #tpu.dot_dimension_numbers<[1], [0], [0], [1], [0, 0, 1, 1], [], []>} : vector<2x32xf32>, vector<32x128xf32>, vector<2x128xf32> -> vector<2x128xf32>
    %399 = arith.addf %396, %398 : vector<2x128xf32>
    %400 = math.tanh %399 : vector<2x128xf32>
    %401 = vector.extract_strided_slice %400 {offsets = [0, 0], sizes = [2, 32], strides = [1, 1]} : vector<2x128xf32> to vector<2x32xf32>
    %cst_170 = arith.constant 5.000000e-01 : f32
    %402 = vector.broadcast %cst_170 : f32 to vector<2x32xf32>
    %403 = arith.mulf %402, %401 : vector<2x32xf32>
    %cst_171 = arith.constant 5.000000e-01 : f32
    %404 = vector.broadcast %cst_171 : f32 to vector<2x32xf32>
    %405 = arith.addf %403, %404 : vector<2x32xf32>
    %406 = vector.extract_strided_slice %400 {offsets = [0, 64], sizes = [2, 32], strides = [1, 1]} : vector<2x128xf32> to vector<2x32xf32>
    %407 = vector.extract_strided_slice %400 {offsets = [0, 96], sizes = [2, 32], strides = [1, 1]} : vector<2x128xf32> to vector<2x32xf32>
    %cst_172 = arith.constant 5.000000e-01 : f32
    %408 = vector.broadcast %cst_172 : f32 to vector<2x32xf32>
    %409 = arith.mulf %408, %407 : vector<2x32xf32>
    %cst_173 = arith.constant 5.000000e-01 : f32
    %410 = vector.broadcast %cst_173 : f32 to vector<2x32xf32>
    %411 = arith.addf %409, %410 : vector<2x32xf32>
    %412 = vector.extract_strided_slice %400 {offsets = [0, 32], sizes = [2, 32], strides = [1, 1]} : vector<2x128xf32> to vector<2x32xf32>
    %cst_174 = arith.constant 5.000000e-01 : f32
    %413 = vector.broadcast %cst_174 : f32 to vector<2x32xf32>
    %414 = arith.mulf %413, %412 : vector<2x32xf32>
    %cst_175 = arith.constant 5.000000e-01 : f32
    %415 = vector.broadcast %cst_175 : f32 to vector<2x32xf32>
    %416 = arith.addf %414, %415 : vector<2x32xf32>
    %417 = arith.mulf %416, %365 : vector<2x32xf32>
    %418 = arith.mulf %405, %406 : vector<2x32xf32>
    %419 = arith.addf %417, %418 : vector<2x32xf32>
    %420 = math.tanh %419 : vector<2x32xf32>
    %421 = arith.mulf %411, %420 : vector<2x32xf32>
    %422 = tpu.concatenate %43, %97, %151, %205, %259, %313, %367, %421 in 0 : vector<2x32xf32>, vector<2x32xf32>, vector<2x32xf32>, vector<2x32xf32>, vector<2x32xf32>, vector<2x32xf32>, vector<2x32xf32>, vector<2x32xf32> -> vector<16x32xf32>
    %c0_176 = arith.constant 0 : index
    %c0_177 = arith.constant 0 : index
    %423 = vector.load %arg7[%c0_176, %c0_177] : memref<32x384xf32, #tpu.memory_space<vmem>>, vector<32x384xf32>
    %cst_178 = arith.constant dense<0.000000e+00> : vector<16x384xf32>
    %424 = tpu.matmul %422, %423, %cst_178 {dimension_numbers = #tpu.dot_dimension_numbers<[1], [0], [0], [1], [0, 0, 1, 1], [], []>} : vector<16x32xf32>, vector<32x384xf32>, vector<16x384xf32> -> vector<16x384xf32>
    %c0_179 = arith.constant 0 : index
    %c0_180 = arith.constant 0 : index
    %425 = vector.load %arg8[%c0_179, %c0_180] : memref<1x384xf32, #tpu.memory_space<vmem>>, vector<1x384xf32>
    %426 = vector.broadcast %425 : vector<1x384xf32> to vector<16x384xf32>
    %427 = arith.addf %424, %426 : vector<16x384xf32>
    %428 = vector.extract_strided_slice %427 {offsets = [0, 0], sizes = [16, 128], strides = [1, 1]} : vector<16x384xf32> to vector<16x128xf32>
    %429 = vector.extract_strided_slice %427 {offsets = [0, 128], sizes = [16, 128], strides = [1, 1]} : vector<16x384xf32> to vector<16x128xf32>
    %430 = vector.extract_strided_slice %427 {offsets = [0, 256], sizes = [16, 128], strides = [1, 1]} : vector<16x384xf32> to vector<16x128xf32>
    %431 = vector.extract_strided_slice %428 {offsets = [0, 0], sizes = [16, 8], strides = [1, 1]} : vector<16x128xf32> to vector<16x8xf32>
    %432 = vector.extract_strided_slice %428 {offsets = [0, 8], sizes = [16, 8], strides = [1, 1]} : vector<16x128xf32> to vector<16x8xf32>
    %433 = arith.maximumf %431, %432 : vector<16x8xf32>
    %434 = vector.extract_strided_slice %428 {offsets = [0, 16], sizes = [16, 8], strides = [1, 1]} : vector<16x128xf32> to vector<16x8xf32>
    %435 = arith.maximumf %433, %434 : vector<16x8xf32>
    %436 = vector.extract_strided_slice %428 {offsets = [0, 24], sizes = [16, 8], strides = [1, 1]} : vector<16x128xf32> to vector<16x8xf32>
    %437 = arith.maximumf %435, %436 : vector<16x8xf32>
    %438 = vector.extract_strided_slice %428 {offsets = [0, 32], sizes = [16, 8], strides = [1, 1]} : vector<16x128xf32> to vector<16x8xf32>
    %439 = arith.maximumf %437, %438 : vector<16x8xf32>
    %440 = vector.extract_strided_slice %428 {offsets = [0, 0], sizes = [16, 8], strides = [1, 1]} : vector<16x128xf32> to vector<16x8xf32>
    %441 = arith.subf %440, %439 : vector<16x8xf32>
    %442 = math.exp %441 : vector<16x8xf32>
    %443 = vector.extract_strided_slice %428 {offsets = [0, 8], sizes = [16, 8], strides = [1, 1]} : vector<16x128xf32> to vector<16x8xf32>
    %444 = arith.subf %443, %439 : vector<16x8xf32>
    %445 = math.exp %444 : vector<16x8xf32>
    %446 = vector.extract_strided_slice %428 {offsets = [0, 16], sizes = [16, 8], strides = [1, 1]} : vector<16x128xf32> to vector<16x8xf32>
    %447 = arith.subf %446, %439 : vector<16x8xf32>
    %448 = math.exp %447 : vector<16x8xf32>
    %449 = vector.extract_strided_slice %428 {offsets = [0, 24], sizes = [16, 8], strides = [1, 1]} : vector<16x128xf32> to vector<16x8xf32>
    %450 = arith.subf %449, %439 : vector<16x8xf32>
    %451 = math.exp %450 : vector<16x8xf32>
    %452 = vector.extract_strided_slice %428 {offsets = [0, 32], sizes = [16, 8], strides = [1, 1]} : vector<16x128xf32> to vector<16x8xf32>
    %453 = arith.subf %452, %439 : vector<16x8xf32>
    %454 = math.exp %453 : vector<16x8xf32>
    %455 = arith.addf %442, %445 : vector<16x8xf32>
    %456 = arith.addf %455, %448 : vector<16x8xf32>
    %457 = arith.addf %456, %451 : vector<16x8xf32>
    %458 = arith.addf %457, %454 : vector<16x8xf32>
    %459 = tpu.reciprocal %458 : vector<16x8xf32> -> vector<16x8xf32>
    %460 = arith.mulf %442, %459 : vector<16x8xf32>
    %461 = arith.mulf %445, %459 : vector<16x8xf32>
    %462 = arith.mulf %448, %459 : vector<16x8xf32>
    %463 = arith.mulf %451, %459 : vector<16x8xf32>
    %464 = arith.mulf %454, %459 : vector<16x8xf32>
    %465 = vector.extract_strided_slice %428 {offsets = [0, 40], sizes = [16, 88], strides = [1, 1]} : vector<16x128xf32> to vector<16x88xf32>
    %466 = tpu.concatenate %460, %461, %462, %463, %464, %465 in 1 : vector<16x8xf32>, vector<16x8xf32>, vector<16x8xf32>, vector<16x8xf32>, vector<16x8xf32>, vector<16x88xf32> -> vector<16x128xf32>
    %c0_181 = arith.constant 0 : index
    %c0_182 = arith.constant 0 : index
    %467 = vector.load %arg9[%c0_181, %c0_182] : memref<16x384xf32, #tpu.memory_space<vmem>>, vector<16x128xf32>
    tpu.vector_store %arg9[%c0_181, %c0_182], %466 {strides = array<i32>} : memref<16x384xf32, #tpu.memory_space<vmem>>, vector<16x128xf32>,
    %468 = math.exp %429 : vector<16x128xf32>
    %c0_183 = arith.constant 0 : index
    %c128 = arith.constant 128 : index
    %469 = vector.load %arg9[%c0_183, %c128] : memref<16x384xf32, #tpu.memory_space<vmem>>, vector<16x128xf32>
    tpu.vector_store %arg9[%c0_183, %c128], %468 {strides = array<i32>} : memref<16x384xf32, #tpu.memory_space<vmem>>, vector<16x128xf32>,
    %c0_184 = arith.constant 0 : index
    %c256 = arith.constant 256 : index
    %470 = vector.load %arg9[%c0_184, %c256] : memref<16x384xf32, #tpu.memory_space<vmem>>, vector<16x128xf32>
    tpu.vector_store %arg9[%c0_184, %c256], %430 {strides = array<i32>} : memref<16x384xf32, #tpu.memory_space<vmem>>, vector<16x128xf32>,
    return
  }
}

</mosaic_0001>

<bundles_post_ra>
// kernel: mdn_lstm_forward.1
= control target key start
LH: loop header
LB: loop body
LE: loop exit
PB: predicated region body
PF: predicated region fallthrough
CT: control target
= control target key end

     0   :  { %14 = vsyncpa [#allocation4], 0  ;;  %s2040_s0 = inlined_call_operand.vmem [shape: f32[16,12], index: 0, kind: input, shape index: {}]   ;;  %s2041_s1 = inlined_call_operand.vmem [shape: f32[12,128], index: 1, kind: input, shape index: {}]   ;;  %s2042_s2 = inlined_call_operand.vmem [shape: f32[32,128], index: 2, kind: input, shape index: {}]   ;;  %s2043_s3 = inlined_call_operand.vmem [shape: f32[1,128], index: 3, kind: input, shape index: {}]   ;;  %s2044_s4 = inlined_call_operand.hbm [shape: f32[32,128], index: 4, kind: input, shape index: {}]   ;;  %s2045_s5 = inlined_call_operand.hbm [shape: f32[32,128], index: 5, kind: input, shape index: {}]   ;;  %s2046_s6 = inlined_call_operand.vmem [shape: f32[1,128], index: 6, kind: input, shape index: {}]   ;;  %s2047_s7 = inlined_call_operand.hbm [shape: f32[32,384], index: 7, kind: input, shape index: {}]   ;;  %s2048_s8 = inlined_call_operand.vmem [shape: f32[1,384], index: 8, kind: input, shape index: {}]   ;;  %s2049_s9 = inlined_call_operand.vmem [shape: f32[16,384], index: 9, kind: output, shape index: {}]  }
   0x1   :  { %15 = vsyncpa [#allocation6], 0  ;;  %s41_s11 = sshll.u32 %s2045_s5, 4  ;;  %s1552_s12 = smov [#allocation5]   ;;  %s42_s11 = int_to_ptr.hbm [resolvable:$true] %s41_s11 }
   0x2   :  { %s43_s13 = sshll.u32 %s1552_s12, 4  ;;  %s28_s16 = sshll.u32 %s2044_s4, 4  ;;  %s44_s13 = int_to_ptr.vmem [resolvable:$true] %s43_s13  ;;  %s29_s16 = int_to_ptr.hbm [resolvable:$true] %s28_s16 }
   0x3   :  { %s1553_s17 = smov 128   ;;  %s1554_s18 = smov 8  }
   0x4   :  { %49 = dma.hbm_to_vmem [thread:$0]  %s42_s11, 512, %s44_s13, [#allocation6], %s1553_s17, %s1553_s17, %s1554_s18  }
   0x5   :  { %s1555_s19 = smov [#allocation3]   ;;  %s56_s23 = sshll.u32 %s2047_s7, 4  ;;  %s57_s23 = int_to_ptr.hbm [resolvable:$true] %s56_s23 }
   0x6   :  { %s30_s20 = sshll.u32 %s1555_s19, 4  ;;  %s1556_s5 = smov [#allocation7]   ;;  %s31_s20 = int_to_ptr.vmem [resolvable:$true] %s30_s20 }
   0x7   :  { %36 = dma.hbm_to_vmem [thread:$0]  %s29_s16, 512, %s31_s20, [#allocation4], %s1553_s17, %s1553_s17, %s1554_s18  }
   0x8   :  { %s58_s24 = sshll.u32 %s1556_s5, 4  ;;  %s1557_s25 = smov 384   ;;  %s59_s24 = int_to_ptr.vmem [resolvable:$true] %s58_s24 }
   0x9   :  { %s1558_s4 = smov 24  }
   0xa   :  { %64 = dma.hbm_to_vmem [thread:$0]  %s57_s23, 1536, %s59_s24, [#allocation6], %s1557_s25, %s1557_s25, %s1558_s4  }
   0xb   :  { %1548 = dma.done.wait [#allocation4], 512  }
   0xc   :  { %1549 = vsyncadd [#allocation4], 4294966784 }
   0xd   :  { %1550 = dma.done.wait [#allocation6], 2048  }
   0xe   :  { %1551 = vsyncadd [#allocation6], 4294965248  ;;  %vm94_vm0 = vcmask 1043456   ;;  %v82_v0 = vld [vmem:[%s2041_s1 + $0x8] sm:$0xf]  ;;  %v81_v1 = vld [vmem:[%s2041_s1] sm:$0xff] }
   0xf   :  { %1337 = vmatpush.msk.msra.mxu0 %vm94_vm0, %v82_v0  ;;  %v79_v2 = vld [vmem:[%s2040_s0] sm:$0xff]  ;;  %vm87_vm1 = vcmask 97280   ;;  %s1559_s1 = smov 64   ;;  %s1560_s12 = smov 32   ;;  %v1648_v13 = vld [vmem:[#allocation3 + $0x18] sm:$0xff]  ;;  %v1653_v14 = vld [vmem:[%s2042_s2 + $0x18] sm:$0xff] }
  0x10   :  { %v1642_v3 = vld [vmem:[%s2043_s3] ss:$0 sm:$0xff]  ;;  %s1561_s3 = smov 96   ;;  %164 = vmatpush.msra.mxu3 %v1648_v13  ;;  %203 = vmatpush.msra.mxu2 %v1653_v14  ;;  %v1662_v16 = vld [vmem:[%s2042_s2 + $0x10] sm:$0xff]  ;;  %v1664_v17 = vld [vmem:[#allocation3 + $0x8] sm:$0xff]  ;;  %vm149_vm2 = vcmask 261120  }
  0x11   :  { %113 = vmatpush.msra.mxu0 %v81_v1  ;;  %v1655_v15 = vld [vmem:[#allocation3 + $0x10] sm:$0xff]  ;;  %v1669_v18 = vld [vmem:[%s2042_s2 + $0x8] sm:$0xff]  ;;  %v1673_v19 = vld [vmem:[#allocation3] sm:$0xff]  ;;  %vm1006_vm3 = vcmask 1041408   ;;  %vm1009_vm4 = vcmask 1045504   ;;  %s1562_s24 = smov 104  }
  0x12   :  { %1338 = vmatmul.msk.f32.vlgmr.msra.gmra.mxu0 %vm87_vm1, %v79_v2  ;;  %165 = vmatpush.msra.mxu3 %v1655_v15  ;;  %v1678_v20 = vld [vmem:[%s2042_s2] sm:$0xff]  ;;  %v1724_v48 = vld [vmem:[#allocation5 + $0x18] sm:$0xff]  ;;  %v1730_v50 = vld [vmem:[#allocation5 + $0x8] sm:$0xff]  ;;  %s1563_s25 = smov 120   ;;  %s1564_s28 = smov 112   ;;  %vm1307_vm13 = vcmask 64512  }
  0x13   :  { %204 = vmatpush.msra.mxu2 %v1662_v16  ;;  %v1706_v24 = vld [vmem:[%s2046_s6] ss:$0 sm:$0xff]  ;;  %282 = vmatpush.msra.mxu1 %v1724_v48  ;;  %v1734_v51 = vld [vmem:[#allocation5] sm:$0xff]  ;;  %vm1310_vm14 = vcmask 130048   ;;  %vm1313_vm15 = vcmask 195584  }
  0x14   :  { %166 = vmatpush.msra.mxu3 %v1664_v17  ;;  %399 = vmatpush.msrb.mxu0 %v1724_v48  ;;  %v1728_v49 = vld [vmem:[#allocation5 + $0x10] sm:$0xff] }
  0x15   :  { %205 = vmatpush.msra.mxu2 %v1669_v18  ;;  %283 = vmatpush.msra.mxu1 %v1728_v49 }
  0x16   :  { %167 = vmatpush.msra.mxu3 %v1673_v19  ;;  %400 = vmatpush.msrb.mxu0 %v1728_v49 }
  0x17   :  { %206 = vmatpush.msra.mxu2 %v1678_v20  ;;  %284 = vmatpush.msra.mxu1 %v1730_v50 }
  0x18   :  { %253 = vmatpush.msrb.mxu3 %v1648_v13  ;;  %401 = vmatpush.msrb.mxu0 %v1730_v50 }
  0x19   :  { %328 = vmatpush.msrb.mxu2 %v1653_v14  ;;  %285 = vmatpush.msra.mxu1 %v1734_v51 }
  0x1a   :  { %254 = vmatpush.msrb.mxu3 %v1655_v15  ;;  %402 = vmatpush.msrb.mxu0 %v1734_v51 }
  0x1b   :  { %329 = vmatpush.msrb.mxu2 %v1662_v16  ;;  %441 = vmatpush.msrb.mxu1 %v1653_v14 }
  0x1c   :  { %255 = vmatpush.msrb.mxu3 %v1664_v17  ;;  %554 = vmatpush.msra.mxu0 %v1653_v14 }
  0x1d   :  { %330 = vmatpush.msrb.mxu2 %v1669_v18  ;;  %442 = vmatpush.msrb.mxu1 %v1662_v16 }
  0x1e   :  { %256 = vmatpush.msrb.mxu3 %v1673_v19  ;;  %555 = vmatpush.msra.mxu0 %v1662_v16 }
  0x1f   :  { %331 = vmatpush.msrb.mxu2 %v1678_v20  ;;  %443 = vmatpush.msrb.mxu1 %v1669_v18 }
  0x20   :  { %556 = vmatpush.msra.mxu0 %v1669_v18 }
  0x21   :  { %444 = vmatpush.msrb.mxu1 %v1678_v20 }
  0x22   :  { %557 = vmatpush.msra.mxu0 %v1678_v20 }
  0x8f   :  { %v115_v4 = vpop.f32.mrf.mxu0 }
  0x90   :  { %v116_v5 = vadd.f32 %v1642_v3, %v115_v4 }
  0x92   :  { %121 = vst [vmem:[#allocation2] sm:$0xff] %v116_v5 }
  0x99   :  { %v127_v6 = vld [vmem:[#allocation2] sm:$0x3]  ;;  %v186_v26 = vld [vmem:[#allocation2 + $0x2] sm:$0x3]  ;;  %v315_v57 = vld [vmem:[#allocation2 + $0x4] sm:$0x3] }
  0x9a   :  { %1384 = vtanh.f32 %v127_v6 }
  0xa0   :  { %v1385_v7 = vpop.eup %1384 }
  0xa1   :  { %132 = vrot.lane.b32.xlu0 %v1385_v7, %s1559_s1  ;;  %v129_v8 = vmul.f32 0.5, %v1385_v7 }
  0xa3   :  { %v130_v9 = vadd.f32 0.5, %v129_v8 }
 0x113   :  { %v133_v10 = vpop.permute.xlu0 %132 }
 0x114   :  { %v135_v11 = vmul.f32 %v133_v10, %v130_v9 }
 0x116   :  { %1386 = vtanh.f32 %v135_v11  ;;  %216 = vrot.lane.b32.xlu2 %v135_v11, %s1560_s12 }
 0x11c   :  { %v1387_v12 = vpop.eup %1386 }
 0x11d   :  { %138 = vrot.lane.b32.xlu0 %v1387_v12, %s1561_s3 }
 0x170   :  { %v217_v41 = vpop.permute.xlu2 %216 }
 0x18f   :  { %v139_v21 = vpop.permute.xlu0 %138 }
 0x190   :  { %v141_v22 = vmul.f32 %v139_v21, %v130_v9 }
 0x192   :  { %147 = vrot.lane.b32.xlu1 %v141_v22, %s1560_s12 }
 0x204   :  { %v148_v23 = vpop.permute.xlu1 %147 }
 0x205   :  { %1340 = vmatmul.msk.f32.vlgmr.msra.gmra.mxu3 %vm149_vm2, %v148_v23  ;;  %1341 = vmatmul.msk.f32.vlgmr.msra.gmra.mxu2 %vm149_vm2, %v148_v23 }
 0x206   :  { %374 = vmatpush.msra.mxu3 %v1648_v13  ;;  %487 = vmatpush.msra.mxu2 %v1648_v13 }
 0x208   :  { %375 = vmatpush.msra.mxu3 %v1655_v15  ;;  %488 = vmatpush.msra.mxu2 %v1655_v15 }
 0x20a   :  { %376 = vmatpush.msra.mxu3 %v1664_v17  ;;  %489 = vmatpush.msra.mxu2 %v1664_v17 }
 0x20c   :  { %377 = vmatpush.msra.mxu3 %v1673_v19  ;;  %490 = vmatpush.msra.mxu2 %v1673_v19 }
 0x288   :  { %v169_v25 = vpop.f32.mrf.mxu3  ;;  %v208_v27 = vpop.f32.mrf.mxu2 }
 0x289   :  { %v170_v28 = vadd.f32 %v1706_v24, %v169_v25  ;;  %v211_v29 = vadd.f32 %v208_v27, %v186_v26 }
 0x28b   :  { %1388 = vtanh.f32 %v170_v28  ;;  %v80_v28 = vld [vmem:[%s2040_s0 + $0x8] sm:$0xff] }
 0x28c   :  { %1390 = vtanh.f32 %v211_v29  ;;  %1339 = vmatmul.msk.f32.gmra.mxu0 %vm87_vm1, %v80_v28 }
 0x291   :  { %v1389_v30 = vpop.eup %1388 }
 0x292   :  { %v1391_v31 = vpop.eup %1390  ;;  %176 = vrot.lane.b32.xlu0 %v1389_v30, %s1559_s1  ;;  %v173_v32 = vmul.f32 0.5, %v1389_v30 }
 0x293   :  { %221 = vrot.lane.b32.xlu1 %v1391_v31, %s1559_s1  ;;  %v213_v33 = vmul.f32 0.5, %v1391_v31 }
 0x294   :  { %v174_v34 = vadd.f32 0.5, %v173_v32 }
 0x295   :  { %v214_v35 = vadd.f32 0.5, %v213_v33 }
 0x297   :  { %v219_v42 = vmul.f32 %v217_v41, %v214_v35 }
 0x304   :  { %v177_v36 = vpop.permute.xlu0 %176 }
 0x305   :  { %v222_v37 = vpop.permute.xlu1 %221  ;;  %v1711_v38 = vmul.f32 %v177_v36, %v174_v34 }
 0x306   :  { %v224_v39 = vmul.f32 %v222_v37, %v214_v35 }
 0x307   :  { %1392 = vtanh.f32 %v1711_v38 }
 0x308   :  { %226 = vrot.lane.b32.xlu2 %v224_v39, %s1560_s12 }
 0x309   :  { %v118_v33 = vpop.f32.mrf.mxu0 }
 0x30d   :  { %v1393_v40 = vpop.eup %1392 }
 0x310   :  { %182 = vrot.lane.b32.xlu2 %v1393_v40, %s1561_s3 }
 0x362   :  { %v227_v43 = vpop.permute.xlu2 %226 }
 0x363   :  { %v1716_v44 = vadd.f32 %v227_v43, %v219_v42 }
 0x365   :  { %1394 = vtanh.f32 %v1716_v44 }
 0x36a   :  { %v183_v46 = vpop.permute.xlu2 %182 }
 0x36b   :  { %v1395_v45 = vpop.eup %1394  ;;  %v1720_v47 = vmul.f32 %v183_v46, %v174_v34  ;;  %v119_v34 = vadd.f32 %v1642_v3, %v118_v33  ;;  %v428_v3 = vld [vmem:[#allocation2 + $0x6] sm:$0x3] }
 0x36c   :  { %232 = vrot.lane.b32.xlu1 %v1395_v45, %s1559_s1 }
 0x36d   :  { %122 = vst [vmem:[#allocation2 + $0x8] sm:$0xff] %v119_v34 }
 0x374   :  { %266 = vrot.lane.b32.xlu1 %v1720_v47, %s1560_s12 }
 0x3de   :  { %v233_v52 = vpop.permute.xlu1 %232 }
 0x3df   :  { %v235_v53 = vmul.f32 %v233_v52, %v214_v35 }
 0x3e1   :  { %237 = vrot.lane.b32.xlu0 %v235_v53, %s1560_s12 }
 0x3e6   :  { %v267_v54 = vpop.permute.xlu1 %266 }
 0x3e7   :  { %1343 = vmatmul.msk.f32.vlgmr.msra.gmra.mxu1 %vm149_vm2, %v267_v54 }
 0x3e8   :  { %600 = vmatpush.msra.mxu1 %v1648_v13 }
 0x3ea   :  { %601 = vmatpush.msra.mxu1 %v1655_v15 }
 0x3ec   :  { %602 = vmatpush.msra.mxu1 %v1664_v17 }
 0x3ee   :  { %603 = vmatpush.msra.mxu1 %v1673_v19 }
 0x453   :  { %v238_v55 = vpop.permute.xlu0 %237 }
 0x454   :  { %1342 = vmatmul.msk.f32.vlgmr.msrb.gmra.mxu3 %vm149_vm2, %v238_v55  ;;  %1344 = vmatmul.msk.f32.vlgmr.msrb.gmra.mxu2 %vm149_vm2, %v238_v55 }
 0x455   :  { %512 = vmatpush.msrb.mxu3 %v1724_v48  ;;  %625 = vmatpush.msrb.mxu2 %v1724_v48 }
 0x457   :  { %513 = vmatpush.msrb.mxu3 %v1728_v49  ;;  %626 = vmatpush.msrb.mxu2 %v1728_v49 }
 0x459   :  { %514 = vmatpush.msrb.mxu3 %v1730_v50  ;;  %627 = vmatpush.msrb.mxu2 %v1730_v50 }
 0x45b   :  { %515 = vmatpush.msrb.mxu3 %v1734_v51  ;;  %628 = vmatpush.msrb.mxu2 %v1734_v51 }
 0x464   :  { %v287_v61 = vpop.f32.mrf.mxu1 }
 0x4d7   :  { %v258_v56 = vpop.f32.mrf.mxu3  ;;  %v333_v58 = vpop.f32.mrf.mxu2 }
 0x4d8   :  { %v259_v59 = vadd.f32 %v1706_v24, %v258_v56  ;;  %v336_v60 = vadd.f32 %v333_v58, %v315_v57 }
 0x4da   :  { %v290_v62 = vadd.f32 %v287_v61, %v259_v59  ;;  %1396 = vtanh.f32 %v336_v60 }
 0x4dc   :  { %1398 = vtanh.f32 %v290_v62 }
 0x4e0   :  { %v1397_v63 = vpop.eup %1396 }
 0x4e1   :  { %342 = vrot.lane.b32.xlu2 %v1397_v63, %s1559_s1  ;;  %v338_v1 = vmul.f32 0.5, %v1397_v63 }
 0x4e2   :  { %v1399_v0 = vpop.eup %1398 }
 0x4e3   :  { %300 = vrot.lane.b32.xlu0 %v1399_v0, %s1559_s1  ;;  %v339_v2 = vadd.f32 0.5, %v338_v1  ;;  %v292_v6 = vmul.f32 0.5, %v1399_v0 }
 0x4e5   :  { %v293_v7 = vadd.f32 0.5, %v292_v6  ;;  %v340_v10 = vmul.f32 %v339_v2, %v1716_v44 }
 0x4e9   :  { %295 = vrot.lane.b32.xlu2 %v1711_v38, %s1560_s12 }
 0x53b   :  { %v343_v4 = vpop.permute.xlu2 %342 }
 0x53c   :  { %v345_v5 = vmul.f32 %v343_v4, %v339_v2 }
 0x53e   :  { %347 = vrot.lane.b32.xlu1 %v345_v5, %s1560_s12 }
 0x543   :  { %v296_v22 = vpop.permute.xlu2 %295 }
 0x544   :  { %v298_v23 = vmul.f32 %v296_v22, %v293_v7 }
 0x555   :  { %v301_v8 = vpop.permute.xlu0 %300 }
 0x556   :  { %v303_v9 = vmul.f32 %v301_v8, %v293_v7 }
 0x558   :  { %305 = vrot.lane.b32.xlu0 %v303_v9, %s1560_s12 }
 0x5b0   :  { %v348_v11 = vpop.permute.xlu1 %347 }
 0x5b1   :  { %v350_v12 = vadd.f32 %v348_v11, %v340_v10 }
 0x5b3   :  { %1400 = vtanh.f32 %v350_v12 }
 0x5b9   :  { %v1401_v21 = vpop.eup %1400 }
 0x5ba   :  { %353 = vrot.lane.b32.xlu1 %v1401_v21, %s1559_s1 }
 0x5ca   :  { %v306_v25 = vpop.permute.xlu0 %305 }
 0x5cb   :  { %v308_v26 = vadd.f32 %v306_v25, %v298_v23 }
 0x5cd   :  { %1402 = vtanh.f32 %v308_v26 }
 0x5d3   :  { %v1403_v27 = vpop.eup %1402 }
 0x5d4   :  { %311 = vrot.lane.b32.xlu2 %v1403_v27, %s1559_s1 }
 0x62c   :  { %v354_v29 = vpop.permute.xlu1 %353 }
 0x62d   :  { %v356_v30 = vmul.f32 %v354_v29, %v339_v2 }
 0x62e   :  { %v312_v31 = vpop.permute.xlu2 %311 }
 0x62f   :  { %v1778_v32 = vmul.f32 %v312_v31, %v293_v7  ;;  %358 = vrot.lane.b32.xlu0 %v356_v30, %s1560_s12 }
 0x631   :  { %383 = vrot.lane.b32.xlu1 %v1778_v32, %s1560_s12  ;;  %v993_v5 = vrot.slane %v1778_v32, 6 }
 0x633   :  { %v1007_v9 = vsel %vm1006_vm3, %v1720_v47, %v993_v5 }
 0x6a1   :  { %v359_v35 = vpop.permute.xlu0 %358 }
 0x6a2   :  { %1345 = vmatmul.msk.f32.vlgmr.msra.gmra.mxu3 %vm149_vm2, %v359_v35  ;;  %1347 = vmatmul.msk.f32.vlgmr.msrb.gmra.mxu1 %vm149_vm2, %v359_v35 }
 0x6a3   :  { %v384_v36 = vpop.permute.xlu1 %383  ;;  %667 = vmatpush.msra.mxu3 %v1653_v14  ;;  %738 = vmatpush.msrb.mxu1 %v1724_v48 }
 0x6a4   :  { %1346 = vmatmul.msk.f32.vlgmr.msrb.gmra.mxu0 %vm149_vm2, %v384_v36 }
 0x6a5   :  { %668 = vmatpush.msra.mxu3 %v1662_v16  ;;  %713 = vmatpush.msrb.mxu0 %v1648_v13 }
 0x6a6   :  { %739 = vmatpush.msrb.mxu1 %v1728_v49 }
 0x6a7   :  { %669 = vmatpush.msra.mxu3 %v1669_v18  ;;  %714 = vmatpush.msrb.mxu0 %v1655_v15 }
 0x6a8   :  { %740 = vmatpush.msrb.mxu1 %v1730_v50 }
 0x6a9   :  { %670 = vmatpush.msra.mxu3 %v1678_v20  ;;  %715 = vmatpush.msrb.mxu0 %v1664_v17 }
 0x6aa   :  { %741 = vmatpush.msrb.mxu1 %v1734_v51 }
 0x6ab   :  { %716 = vmatpush.msrb.mxu0 %v1673_v19 }
 0x71f   :  { %v446_v37 = vpop.f32.mrf.mxu1 }
 0x720   :  { %v449_v38 = vadd.f32 %v446_v37, %v428_v3 }
 0x721   :  { %v404_v41 = vpop.f32.mrf.mxu0 }
 0x722   :  { %1404 = vtanh.f32 %v449_v38 }
 0x725   :  { %v379_v39 = vpop.f32.mrf.mxu3 }
 0x726   :  { %v380_v40 = vadd.f32 %v1706_v24, %v379_v39 }
 0x728   :  { %v1405_v42 = vpop.eup %1404  ;;  %v407_v43 = vadd.f32 %v404_v41, %v380_v40 }
 0x729   :  { %455 = vrot.lane.b32.xlu2 %v1405_v42, %s1559_s1  ;;  %v451_v45 = vmul.f32 0.5, %v1405_v42 }
 0x72a   :  { %1406 = vtanh.f32 %v407_v43 }
 0x72b   :  { %v452_v46 = vadd.f32 0.5, %v451_v45 }
 0x72d   :  { %v453_v58 = vmul.f32 %v452_v46, %v350_v12  ;;  %v541_v12 = vld [vmem:[#allocation2 + $0x8] sm:$0x3] }
 0x730   :  { %v1407_v44 = vpop.eup %1406 }
 0x731   :  { %413 = vrot.lane.b32.xlu0 %v1407_v44, %s1559_s1  ;;  %v409_v54 = vmul.f32 0.5, %v1407_v44 }
 0x733   :  { %v410_v55 = vadd.f32 0.5, %v409_v54 }
 0x735   :  { %v411_v61 = vmul.f32 %v410_v55, %v308_v26 }
 0x783   :  { %v456_v52 = vpop.permute.xlu2 %455 }
 0x784   :  { %v458_v53 = vmul.f32 %v456_v52, %v452_v46 }
 0x786   :  { %460 = vrot.lane.b32.xlu1 %v458_v53, %s1560_s12 }
 0x7a3   :  { %v414_v56 = vpop.permute.xlu0 %413 }
 0x7a4   :  { %v416_v57 = vmul.f32 %v414_v56, %v410_v55 }
 0x7a6   :  { %418 = vrot.lane.b32.xlu2 %v416_v57, %s1560_s12 }
 0x7f8   :  { %v461_v59 = vpop.permute.xlu1 %460 }
 0x7f9   :  { %v463_v60 = vadd.f32 %v461_v59, %v453_v58 }
 0x7fb   :  { %1408 = vtanh.f32 %v463_v60 }
 0x800   :  { %v419_v62 = vpop.permute.xlu2 %418 }
 0x801   :  { %v1409_v63 = vpop.eup %1408  ;;  %v421_v0 = vadd.f32 %v419_v62, %v411_v61 }
 0x802   :  { %466 = vrot.lane.b32.xlu0 %v1409_v63, %s1559_s1 }
 0x803   :  { %1410 = vtanh.f32 %v421_v0 }
 0x809   :  { %v1411_v1 = vpop.eup %1410 }
 0x80a   :  { %424 = vrot.lane.b32.xlu1 %v1411_v1, %s1559_s1 }
 0x874   :  { %v467_v2 = vpop.permute.xlu0 %466 }
 0x875   :  { %v469_v4 = vmul.f32 %v467_v2, %v452_v46 }
 0x877   :  { %471 = vrot.lane.b32.xlu2 %v469_v4, %s1560_s12 }
 0x87c   :  { %v425_v6 = vpop.permute.xlu1 %424 }
 0x87d   :  { %v427_v7 = vmul.f32 %v425_v6, %v410_v55 }
 0x87f   :  { %v995_v8 = vrot.slane %v427_v7, 4  ;;  %496 = vrot.lane.b32.xlu0 %v427_v7, %s1560_s12 }
 0x881   :  { %v1008_v10 = vsel %vm94_vm0, %v1007_v9, %v995_v8 }
 0x8d1   :  { %v472_v11 = vpop.permute.xlu2 %471 }
 0x8d2   :  { %1348 = vmatmul.msk.f32.vlgmr.msra.gmra.mxu2 %vm149_vm2, %v472_v11  ;;  %1350 = vmatmul.msk.f32.vlgmr.msra.gmra.mxu0 %vm149_vm2, %v472_v11 }
 0x8d3   :  { %780 = vmatpush.msra.mxu2 %v1653_v14  ;;  %851 = vmatpush.msra.mxu0 %v1724_v48 }
 0x8d5   :  { %781 = vmatpush.msra.mxu2 %v1662_v16  ;;  %852 = vmatpush.msra.mxu0 %v1728_v49 }
 0x8d7   :  { %782 = vmatpush.msra.mxu2 %v1669_v18  ;;  %853 = vmatpush.msra.mxu0 %v1730_v50 }
 0x8d9   :  { %783 = vmatpush.msra.mxu2 %v1678_v20  ;;  %854 = vmatpush.msra.mxu0 %v1734_v51 }
 0x8f1   :  { %v497_v47 = vpop.permute.xlu0 %496 }
 0x8f2   :  { %1349 = vmatmul.msk.f32.vlgmr.msrb.gmra.mxu3 %vm149_vm2, %v497_v47 }
 0x8f3   :  { %826 = vmatpush.msrb.mxu3 %v1648_v13 }
 0x8f5   :  { %827 = vmatpush.msrb.mxu3 %v1655_v15 }
 0x8f7   :  { %828 = vmatpush.msrb.mxu3 %v1664_v17 }
 0x8f9   :  { %829 = vmatpush.msrb.mxu3 %v1673_v19 }
 0x94f   :  { %v559_v21 = vpop.f32.mrf.mxu0 }
 0x950   :  { %v562_v22 = vadd.f32 %v559_v21, %v541_v12  ;;  %v767_v21 = vld [vmem:[#allocation2 + $0xc] sm:$0x3] }
 0x952   :  { %1412 = vtanh.f32 %v562_v22 }
 0x955   :  { %v492_v25 = vpop.f32.mrf.mxu2 }
 0x956   :  { %v493_v26 = vadd.f32 %v1706_v24, %v492_v25 }
 0x958   :  { %v1413_v23 = vpop.eup %1412 }
 0x959   :  { %568 = vrot.lane.b32.xlu1 %v1413_v23, %s1559_s1  ;;  %v564_v30 = vmul.f32 0.5, %v1413_v23 }
 0x95b   :  { %v565_v31 = vadd.f32 0.5, %v564_v30 }
 0x95d   :  { %v566_v37 = vmul.f32 %v565_v31, %v463_v60 }
 0x975   :  { %v517_v27 = vpop.f32.mrf.mxu3 }
 0x976   :  { %v520_v28 = vadd.f32 %v517_v27, %v493_v26 }
 0x978   :  { %1414 = vtanh.f32 %v520_v28 }
 0x97e   :  { %v1415_v29 = vpop.eup %1414 }
 0x97f   :  { %526 = vrot.lane.b32.xlu2 %v1415_v29, %s1559_s1  ;;  %v522_v34 = vmul.f32 0.5, %v1415_v29 }
 0x981   :  { %v523_v35 = vadd.f32 0.5, %v522_v34 }
 0x983   :  { %v524_v41 = vmul.f32 %v523_v35, %v421_v0 }
 0x9cb   :  { %v569_v32 = vpop.permute.xlu1 %568 }
 0x9cc   :  { %v571_v33 = vmul.f32 %v569_v32, %v565_v31 }
 0x9ce   :  { %573 = vrot.lane.b32.xlu0 %v571_v33, %s1560_s12 }
 0x9d9   :  { %v527_v36 = vpop.permute.xlu2 %526 }
 0x9da   :  { %v529_v3 = vmul.f32 %v527_v36, %v523_v35 }
 0x9dc   :  { %531 = vrot.lane.b32.xlu1 %v529_v3, %s1560_s12 }
 0xa40   :  { %v574_v38 = vpop.permute.xlu0 %573 }
 0xa41   :  { %v576_v39 = vadd.f32 %v574_v38, %v566_v37 }
 0xa43   :  { %1416 = vtanh.f32 %v576_v39 }
 0xa49   :  { %v1417_v40 = vpop.eup %1416 }
 0xa4a   :  { %579 = vrot.lane.b32.xlu2 %v1417_v40, %s1559_s1 }
 0xa4e   :  { %v532_v42 = vpop.permute.xlu1 %531 }
 0xa4f   :  { %v534_v43 = vadd.f32 %v532_v42, %v524_v41 }
 0xa51   :  { %1418 = vtanh.f32 %v534_v43 }
 0xa57   :  { %v1419_v44 = vpop.eup %1418 }
 0xa58   :  { %537 = vrot.lane.b32.xlu0 %v1419_v44, %s1559_s1 }
 0xaa4   :  { %v580_v45 = vpop.permute.xlu2 %579 }
 0xaa5   :  { %v582_v46 = vmul.f32 %v580_v45, %v565_v31 }
 0xaa7   :  { %584 = vrot.lane.b32.xlu1 %v582_v46, %s1560_s12 }
 0xaca   :  { %v538_v52 = vpop.permute.xlu0 %537 }
 0xacb   :  { %v540_v53 = vmul.f32 %v538_v52, %v523_v35 }
 0xacd   :  { %v997_v54 = vrot.slane %v540_v53, 2  ;;  %609 = vrot.lane.b32.xlu2 %v540_v53, %s1560_s12 }
 0xacf   :  { %v1837_v55 = vsel %vm1009_vm4, %v1008_v10, %v997_v54 }
 0xb19   :  { %v585_v56 = vpop.permute.xlu1 %584 }
 0xb1a   :  { %1351 = vmatmul.msk.f32.vlgmr.msra.gmra.mxu1 %vm149_vm2, %v585_v56  ;;  %1353 = vmatmul.msk.f32.vlgmr.msra.gmra.mxu3 %vm149_vm2, %v585_v56 }
 0xb1b   :  { %893 = vmatpush.msra.mxu1 %v1653_v14  ;;  %964 = vmatpush.msra.mxu3 %v1724_v48  ;;  %v654_v14 = vld [vmem:[#allocation2 + $0xa] sm:$0x3] }
 0xb1d   :  { %894 = vmatpush.msra.mxu1 %v1662_v16  ;;  %965 = vmatpush.msra.mxu3 %v1728_v49 }
 0xb1f   :  { %895 = vmatpush.msra.mxu1 %v1669_v18  ;;  %966 = vmatpush.msra.mxu3 %v1730_v50 }
 0xb21   :  { %896 = vmatpush.msra.mxu1 %v1678_v20  ;;  %967 = vmatpush.msra.mxu3 %v1734_v51 }
 0xb27   :  { %v610_v57 = vpop.permute.xlu2 %609 }
 0xb28   :  { %1352 = vmatmul.msk.f32.vlgmr.msrb.gmra.mxu2 %vm149_vm2, %v610_v57 }
 0xb29   :  { %939 = vmatpush.msrb.mxu2 %v1648_v13 }
 0xb2b   :  { %940 = vmatpush.msrb.mxu2 %v1655_v15 }
 0xb2d   :  { %941 = vmatpush.msrb.mxu2 %v1664_v17 }
 0xb2f   :  { %942 = vmatpush.msrb.mxu2 %v1673_v19 }
 0xb97   :  { %v605_v49 = vpop.f32.mrf.mxu1 }
 0xb98   :  { %v606_v20 = vadd.f32 %v1706_v24, %v605_v49 }
 0xb9d   :  { %v672_v16 = vpop.f32.mrf.mxu3 }
 0xb9e   :  { %v675_v18 = vadd.f32 %v672_v16, %v654_v14  ;;  %v880_v14 = vld [vmem:[#allocation2 + $0xe] sm:$0x3] }
 0xba0   :  { %1420 = vtanh.f32 %v675_v18 }
 0xba6   :  { %v1421_v48 = vpop.eup %1420 }
 0xba7   :  { %681 = vrot.lane.b32.xlu0 %v1421_v48, %s1559_s1  ;;  %v677_v15 = vmul.f32 0.5, %v1421_v48 }
 0xba9   :  { %v678_v17 = vadd.f32 0.5, %v677_v15 }
 0xbab   :  { %v630_v50 = vpop.f32.mrf.mxu2  ;;  %v679_v63 = vmul.f32 %v678_v17, %v576_v39 }
 0xbac   :  { %v633_v51 = vadd.f32 %v630_v50, %v606_v20 }
 0xbae   :  { %1422 = vtanh.f32 %v633_v51 }
 0xbb4   :  { %v1423_v13 = vpop.eup %1422 }
 0xbb5   :  { %639 = vrot.lane.b32.xlu1 %v1423_v13, %s1559_s1  ;;  %v635_v59 = vmul.f32 0.5, %v1423_v13 }
 0xbb7   :  { %v636_v60 = vadd.f32 0.5, %v635_v59 }
 0xbb9   :  { %v637_v4 = vmul.f32 %v636_v60, %v534_v43 }
 0xc19   :  { %v682_v58 = vpop.permute.xlu0 %681 }
 0xc1a   :  { %v684_v19 = vmul.f32 %v682_v58, %v678_v17 }
 0xc1c   :  { %686 = vrot.lane.b32.xlu2 %v684_v19, %s1560_s12 }
 0xc27   :  { %v640_v61 = vpop.permute.xlu1 %639 }
 0xc28   :  { %v642_v62 = vmul.f32 %v640_v61, %v636_v60 }
 0xc2a   :  { %644 = vrot.lane.b32.xlu0 %v642_v62, %s1560_s12 }
 0xc76   :  { %v687_v0 = vpop.permute.xlu2 %686 }
 0xc77   :  { %v689_v1 = vadd.f32 %v687_v0, %v679_v63 }
 0xc79   :  { %1424 = vtanh.f32 %v689_v1 }
 0xc7f   :  { %v1425_v2 = vpop.eup %1424 }
 0xc80   :  { %692 = vrot.lane.b32.xlu1 %v1425_v2, %s1559_s1 }
 0xc9c   :  { %v645_v5 = vpop.permute.xlu0 %644 }
 0xc9d   :  { %v647_v6 = vadd.f32 %v645_v5, %v637_v4 }
 0xc9f   :  { %1426 = vtanh.f32 %v647_v6 }
 0xca5   :  { %v1427_v7 = vpop.eup %1426 }
 0xca6   :  { %650 = vrot.lane.b32.xlu2 %v1427_v7, %s1559_s1 }
 0xcf2   :  { %v693_v8 = vpop.permute.xlu1 %692 }
 0xcf3   :  { %v695_v9 = vmul.f32 %v693_v8, %v678_v17 }
 0xcf5   :  { %697 = vrot.lane.b32.xlu0 %v695_v9, %s1560_s12 }
 0xd00   :  { %v651_v10 = vpop.permute.xlu2 %650 }
 0xd01   :  { %v1862_v11 = vmul.f32 %v651_v10, %v636_v60 }
 0xd03   :  { %722 = vrot.lane.b32.xlu1 %v1862_v11, %s1560_s12 }
 0xd67   :  { %v698_v47 = vpop.permute.xlu0 %697 }
 0xd68   :  { %1354 = vmatmul.msk.f32.vlgmr.msrb.gmra.mxu0 %vm149_vm2, %v698_v47  ;;  %1356 = vmatmul.msk.f32.vlgmr.msra.gmra.mxu2 %vm149_vm2, %v698_v47 }
 0xd75   :  { %v723_v12 = vpop.permute.xlu1 %722 }
 0xd76   :  { %1355 = vmatmul.msk.f32.vlgmr.msrb.gmra.mxu1 %vm149_vm2, %v723_v12 }
 0xde5   :  { %v718_v25 = vpop.f32.mrf.mxu0 }
 0xde6   :  { %v719_v26 = vadd.f32 %v1706_v24, %v718_v25 }
 0xdeb   :  { %v785_v22 = vpop.f32.mrf.mxu2 }
 0xdec   :  { %v788_v23 = vadd.f32 %v785_v22, %v767_v21 }
 0xdee   :  { %1428 = vtanh.f32 %v788_v23 }
 0xdf3   :  { %v743_v27 = vpop.f32.mrf.mxu1 }
 0xdf4   :  { %v1429_v28 = vpop.eup %1428  ;;  %v746_v29 = vadd.f32 %v743_v27, %v719_v26 }
 0xdf5   :  { %794 = vrot.lane.b32.xlu2 %v1429_v28, %s1559_s1  ;;  %v790_v31 = vmul.f32 0.5, %v1429_v28 }
 0xdf6   :  { %1430 = vtanh.f32 %v746_v29 }
 0xdf7   :  { %v791_v32 = vadd.f32 0.5, %v790_v31 }
 0xdf9   :  { %v792_v38 = vmul.f32 %v791_v32, %v689_v1 }
 0xdfc   :  { %v1431_v30 = vpop.eup %1430 }
 0xdfd   :  { %752 = vrot.lane.b32.xlu0 %v1431_v30, %s1559_s1  ;;  %v748_v35 = vmul.f32 0.5, %v1431_v30 }
 0xdff   :  { %v749_v36 = vadd.f32 0.5, %v748_v35  ;;  %v1021_v35 = vld [vmem:[#allocation7 + $0x38] sm:$0xff] }
 0xe01   :  { %v750_v41 = vmul.f32 %v749_v36, %v647_v6 }
 0xe4f   :  { %v795_v33 = vpop.permute.xlu2 %794 }
 0xe50   :  { %v797_v34 = vmul.f32 %v795_v33, %v791_v32  ;;  %v1025_v33 = vld [vmem:[#allocation7 + $0x58] sm:$0xff] }
 0xe51   :  { %1102 = vmatpush.msra.mxu2 %v1025_v33 }
 0xe52   :  { %799 = vrot.lane.b32.xlu1 %v797_v34, %s1560_s12  ;;  %v1020_v34 = vld [vmem:[#allocation7 + $0x30] sm:$0xff] }
 0xe6f   :  { %v753_v3 = vpop.permute.xlu0 %752 }
 0xe70   :  { %v755_v37 = vmul.f32 %v753_v3, %v749_v36  ;;  %v1018_v3 = vld [vmem:[#allocation7 + $0x20] sm:$0xff] }
 0xe72   :  { %757 = vrot.lane.b32.xlu2 %v755_v37, %s1560_s12  ;;  %v1019_v37 = vld [vmem:[#allocation7 + $0x28] sm:$0xff] }
 0xec4   :  { %v800_v39 = vpop.permute.xlu1 %799 }
 0xec5   :  { %v802_v40 = vadd.f32 %v800_v39, %v792_v38  ;;  %v1014_v38 = vld [vmem:[#allocation7] sm:$0xff]  ;;  %v1015_v39 = vld [vmem:[#allocation7 + $0x8] sm:$0xff] }
 0xec7   :  { %1432 = vtanh.f32 %v802_v40 }
 0xecc   :  { %v758_v42 = vpop.permute.xlu2 %757 }
 0xecd   :  { %v1433_v43 = vpop.eup %1432  ;;  %v760_v44 = vadd.f32 %v758_v42, %v750_v41 }
 0xece   :  { %805 = vrot.lane.b32.xlu0 %v1433_v43, %s1559_s1 }
 0xecf   :  { %1434 = vtanh.f32 %v760_v44 }
 0xed5   :  { %v1435_v45 = vpop.eup %1434 }
 0xed6   :  { %763 = vrot.lane.b32.xlu1 %v1435_v45, %s1559_s1 }
 0xf40   :  { %v806_v46 = vpop.permute.xlu0 %805 }
 0xf41   :  { %v808_v52 = vmul.f32 %v806_v46, %v791_v32  ;;  %v1024_v32 = vld [vmem:[#allocation7 + $0x50] sm:$0xff] }
 0xf42   :  { %1079 = vmatpush.msrb.mxu1 %v1024_v32 }
 0xf43   :  { %810 = vrot.lane.b32.xlu2 %v808_v52, %s1560_s12 }
 0xf44   :  { %1080 = vmatpush.msrb.mxu1 %v1021_v35 }
 0xf46   :  { %1081 = vmatpush.msrb.mxu1 %v1018_v3 }
 0xf48   :  { %v764_v53 = vpop.permute.xlu1 %763  ;;  %1082 = vmatpush.msrb.mxu1 %v1015_v39 }
 0xf49   :  { %v766_v54 = vmul.f32 %v764_v53, %v749_v36  ;;  %v1022_v36 = vld [vmem:[#allocation7 + $0x40] sm:$0xff] }
 0xf4a   :  { %1103 = vmatpush.msra.mxu2 %v1022_v36 }
 0xf4b   :  { %835 = vrot.lane.b32.xlu0 %v766_v54, %s1560_s12  ;;  %v999_v10 = vrot.slane %v766_v54, 6  ;;  %v1026_v54 = vld [vmem:[%s2048_s8] sm:$0x7] }
 0xf4c   :  { %1104 = vmatpush.msra.mxu2 %v1019_v37 }
 0xf4d   :  { %v1011_v22 = vsel %vm1006_vm3, %v1862_v11, %v999_v10  ;;  %v1023_v11 = vld [vmem:[#allocation7 + $0x48] sm:$0xff] }
 0xf4e   :  { %1056 = vmatpush.msrb.mxu0 %v1023_v11 }
 0xf50   :  { %1057 = vmatpush.msrb.mxu0 %v1020_v34 }
 0xf9d   :  { %v811_v56 = vpop.permute.xlu2 %810 }
 0xf9e   :  { %1357 = vmatmul.msk.f32.vlgmr.msrb.gmra.mxu3 %vm149_vm2, %v811_v56  ;;  %1359 = vmatmul.msk.f32.vlgmr.msra.gmra.mxu1 %vm149_vm2, %v811_v56  ;;  %v1028_v56 = vperm.slane %v1026_v54, 0 }
 0xfbd   :  { %v836_v57 = vpop.permute.xlu0 %835 }
 0xfbe   :  { %1358 = vmatmul.msk.f32.vlgmr.msra.gmra.mxu0 %vm149_vm2, %v836_v57  ;;  %v1029_v57 = vperm.slane %v1026_v54, 1 }
0x101b   :  { %v898_v16 = vpop.f32.mrf.mxu1 }
0x101c   :  { %v901_v18 = vadd.f32 %v898_v16, %v880_v14 }
0x101e   :  { %1436 = vtanh.f32 %v901_v18 }
0x1021   :  { %v831_v49 = vpop.f32.mrf.mxu3 }
0x1022   :  { %v832_v20 = vadd.f32 %v1706_v24, %v831_v49 }
0x1024   :  { %v1437_v48 = vpop.eup %1436 }
0x1025   :  { %907 = vrot.lane.b32.xlu1 %v1437_v48, %s1559_s1  ;;  %v903_v15 = vmul.f32 0.5, %v1437_v48 }
0x1027   :  { %v904_v17 = vadd.f32 0.5, %v903_v15 }
0x1029   :  { %v905_v63 = vmul.f32 %v904_v17, %v802_v40 }
0x103b   :  { %v856_v50 = vpop.f32.mrf.mxu0 }
0x103c   :  { %v859_v51 = vadd.f32 %v856_v50, %v832_v20  ;;  %v1030_v20 = vperm.slane %v1026_v54, 2 }
0x103e   :  { %1438 = vtanh.f32 %v859_v51 }
0x1044   :  { %v1439_v13 = vpop.eup %1438 }
0x1045   :  { %865 = vrot.lane.b32.xlu2 %v1439_v13, %s1559_s1  ;;  %v861_v59 = vmul.f32 0.5, %v1439_v13 }
0x1047   :  { %v862_v60 = vadd.f32 0.5, %v861_v59 }
0x1049   :  { %v863_v2 = vmul.f32 %v862_v60, %v760_v44 }
0x1097   :  { %v908_v58 = vpop.permute.xlu1 %907 }
0x1098   :  { %v910_v19 = vmul.f32 %v908_v58, %v904_v17 }
0x109a   :  { %912 = vrot.lane.b32.xlu0 %v910_v19, %s1560_s12 }
0x109f   :  { %v866_v61 = vpop.permute.xlu2 %865 }
0x10a0   :  { %v868_v62 = vmul.f32 %v866_v61, %v862_v60 }
0x10a2   :  { %870 = vrot.lane.b32.xlu1 %v868_v62, %s1560_s12 }
0x110c   :  { %v913_v0 = vpop.permute.xlu0 %912 }
0x110d   :  { %v915_v1 = vadd.f32 %v913_v0, %v905_v63 }
0x110f   :  { %1440 = vtanh.f32 %v915_v1 }
0x1114   :  { %v871_v4 = vpop.permute.xlu1 %870 }
0x1115   :  { %v1441_v5 = vpop.eup %1440  ;;  %v873_v6 = vadd.f32 %v871_v4, %v863_v2 }
0x1116   :  { %918 = vrot.lane.b32.xlu2 %v1441_v5, %s1559_s1 }
0x1117   :  { %1442 = vtanh.f32 %v873_v6 }
0x111d   :  { %v1443_v7 = vpop.eup %1442 }
0x111e   :  { %876 = vrot.lane.b32.xlu0 %v1443_v7, %s1559_s1 }
0x1170   :  { %v919_v8 = vpop.permute.xlu2 %918 }
0x1171   :  { %v921_v9 = vmul.f32 %v919_v8, %v904_v17 }
0x1173   :  { %923 = vrot.lane.b32.xlu1 %v921_v9, %s1560_s12 }
0x1190   :  { %v877_v47 = vpop.permute.xlu0 %876 }
0x1191   :  { %v879_v12 = vmul.f32 %v877_v47, %v862_v60 }
0x1193   :  { %v1001_v21 = vrot.slane %v879_v12, 4  ;;  %948 = vrot.lane.b32.xlu2 %v879_v12, %s1560_s12 }
0x1195   :  { %v1893_v23 = vsel %vm94_vm0, %v1011_v22, %v1001_v21  ;;  %vm1318_vm0 = vcmask 326656  }
0x11e5   :  { %v924_v25 = vpop.permute.xlu1 %923 }
0x11e6   :  { %1360 = vmatmul.msk.f32.vlgmr.msrb.gmra.mxu2 %vm149_vm2, %v924_v25 }
0x11ed   :  { %v949_v26 = vpop.permute.xlu2 %948 }
0x11ee   :  { %1361 = vmatmul.msk.f32.vlgmr.msra.gmra.mxu3 %vm149_vm2, %v949_v26 }
0x1269   :  { %v944_v27 = vpop.f32.mrf.mxu2 }
0x126a   :  { %v945_v28 = vadd.f32 %v1706_v24, %v944_v27  ;;  %v1017_v24 = vld [vmem:[#allocation7 + $0x18] sm:$0xff] }
0x126b   :  { %1058 = vmatpush.msrb.mxu0 %v1017_v24 }
0x126d   :  { %1059 = vmatpush.msrb.mxu0 %v1014_v38 }
0x1271   :  { %v969_v29 = vpop.f32.mrf.mxu3 }
0x1272   :  { %v972_v30 = vadd.f32 %v969_v29, %v945_v28 }
0x1274   :  { %1444 = vtanh.f32 %v972_v30 }
0x127a   :  { %v1445_v31 = vpop.eup %1444 }
0x127b   :  { %978 = vrot.lane.b32.xlu0 %v1445_v31, %s1559_s1  ;;  %v974_v40 = vmul.f32 0.5, %v1445_v31 }
0x127d   :  { %v975_v41 = vadd.f32 0.5, %v974_v40 }
0x127f   :  { %v976_v45 = vmul.f32 %v975_v41, %v873_v6 }
0x1283   :  { %1036 = vrot.lane.b32.xlu0 %v1837_v55, %s1560_s12  ;;  %v1016_v55 = vld [vmem:[#allocation7 + $0x10] sm:$0xff] }
0x1284   :  { %1105 = vmatpush.msra.mxu2 %v1016_v55 }
0x12ed   :  { %v979_v42 = vpop.permute.xlu0 %978 }
0x12ee   :  { %v981_v43 = vmul.f32 %v979_v42, %v975_v41 }
0x12f0   :  { %983 = vrot.lane.b32.xlu1 %v981_v43, %s1560_s12 }
0x12f5   :  { %v1037_v44 = vpop.permute.xlu0 %1036 }
0x12f6   :  { %1362 = vmatmul.msk.f32.vlgmr.msrb.gmra.mxu0 %vm149_vm2, %v1037_v44  ;;  %1364 = vmatmul.msk.f32.vlgmr.msrb.gmra.mxu1 %vm149_vm2, %v1037_v44 }
0x12f7   :  { %1366 = vmatmul.msk.f32.vlgmr.msra.gmra.mxu2 %vm149_vm2, %v1037_v44 }
0x1362   :  { %v984_v46 = vpop.permute.xlu1 %983 }
0x1363   :  { %v986_v52 = vadd.f32 %v984_v46, %v976_v45 }
0x1365   :  { %1446 = vtanh.f32 %v986_v52 }
0x136b   :  { %v1447_v53 = vpop.eup %1446 }
0x136c   :  { %989 = vrot.lane.b32.xlu2 %v1447_v53, %s1559_s1  ;;  %s1565_s1 = smov 16  }
0x1373   :  { %v1061_v14 = vpop.f32.mrf.mxu0  ;;  %v1084_v16 = vpop.f32.mrf.mxu1 }
0x1374   :  { %v1909_v18 = vadd.f32 %v1061_v14, %v1028_v56  ;;  %v1085_v48 = vadd.f32 %v1084_v16, %v1029_v57 }
0x1376   :  { %v1323_v49 = vmul.f32 1.442695, %v1085_v48  ;;  %1131 = vrot.lane.b32.xlu0 %v1909_v18, %s1562_s24  ;;  %1115 = vrot.lane.b32.xlu2 %v1909_v18, %s1563_s25 }
0x1378   :  { %1448 = vpow2.f32 %v1323_v49 }
0x137a   :  { %v1107_v50 = vpop.f32.mrf.mxu2 }
0x137b   :  { %v1108_v51 = vadd.f32 %v1107_v50, %v1030_v20 }
0x137d   :  { %1329 = vst [vmem:[%s2049_s9 + $0x10] sm:$0xff] %v1108_v51 }
0x137e   :  { %v1449_v13 = vpop.eup %1448 }
0x137f   :  { %1327 = vst [vmem:[%s2049_s9 + $0x8] sm:$0xff] %v1449_v13 }
0x13c6   :  { %v990_v15 = vpop.permute.xlu2 %989 }
0x13c7   :  { %v992_v17 = vmul.f32 %v990_v15, %v975_v41 }
0x13c9   :  { %v1004_v58 = vrot.slane %v992_v17, 2 }
0x13cb   :  { %v1013_v19 = vsel %vm1009_vm4, %v1893_v23, %v1004_v58 }
0x13cc   :  { %1038 = vrot.lane.b32.xlu1 %v1013_v19, %s1560_s12 }
0x13d0   :  { %v1116_v5 = vpop.permute.xlu2 %1115 }
0x13d1   :  { %v1121_v8 = vmax.f32 %v1909_v18, %v1116_v5 }
0x13d4   :  { %1123 = vrot.lane.b32.xlu1 %v1909_v18, %s1564_s28 }
0x13e8   :  { %v1132_v10 = vpop.permute.xlu0 %1131 }
0x143e   :  { %v1039_v59 = vpop.permute.xlu1 %1038 }
0x143f   :  { %1363 = vmatmul.msk.f32.gmra.mxu0 %vm149_vm2, %v1039_v59  ;;  %1365 = vmatmul.msk.f32.gmra.mxu1 %vm149_vm2, %v1039_v59 }
0x1440   :  { %1367 = vmatmul.msk.f32.gmra.mxu2 %vm149_vm2, %v1039_v59 }
0x1446   :  { %v1124_v6 = vpop.permute.xlu1 %1123 }
0x1447   :  { %v1129_v9 = vmax.f32 %v1121_v8, %v1124_v6 }
0x1449   :  { %v1137_v47 = vmax.f32 %v1129_v9, %v1132_v10 }
0x14bc   :  { %v1064_v60 = vpop.f32.mrf.mxu0  ;;  %v1087_v61 = vpop.f32.mrf.mxu1 }
0x14bd   :  { %v1929_v62 = vadd.f32 %v1064_v60, %v1028_v56  ;;  %v1088_v63 = vadd.f32 %v1087_v61, %v1029_v57 }
0x14bf   :  { %v1325_v0 = vmul.f32 1.442695, %v1088_v63  ;;  %1133 = vrot.lane.b32.xlu1 %v1929_v62, %s1562_s24  ;;  %1125 = vrot.lane.b32.xlu2 %v1929_v62, %s1564_s28 }
0x14c0   :  { %1117 = vrot.lane.b32.xlu0 %v1929_v62, %s1563_s25 }
0x14c1   :  { %1450 = vpow2.f32 %v1325_v0 }
0x14c3   :  { %v1110_v1 = vpop.f32.mrf.mxu2 }
0x14c4   :  { %v1111_v2 = vadd.f32 %v1110_v1, %v1030_v20 }
0x14c6   :  { %1330 = vst [vmem:[%s2049_s9 + $0x28] sm:$0xff] %v1111_v2 }
0x14c7   :  { %v1451_v4 = vpop.eup %1450  ;;  %1139 = vrot.lane.b32.xlu2 %v1909_v18, %s1561_s3 }
0x14c8   :  { %1328 = vst [vmem:[%s2049_s9 + $0x20] sm:$0xff] %v1451_v4  ;;  %1141 = vrot.lane.b32.xlu0 %v1929_v62, %s1561_s3 }
0x1519   :  { %v1126_v7 = vpop.permute.xlu2 %1125 }
0x1521   :  { %v1140_v12 = vpop.permute.xlu2 %1139 }
0x1522   :  { %v1948_v21 = vmax.f32 %v1137_v47, %v1140_v12 }
0x1524   :  { %1179 = vrot.lane.b32.xlu2 %v1948_v21, %s1558_s4  ;;  %1167 = vrot.lane.b32.xlu0 %v1948_v21, %s1565_s1  ;;  %v1147_v51 = vsub.f32 %v1909_v18, %v1948_v21 }
0x1525   :  { %1155 = vrot.lane.b32.xlu1 %v1948_v21, %s1554_s18 }
0x1526   :  { %v1149_v17 = vmul.f32 1.442695, %v1147_v51 }
0x1531   :  { %v1134_v26 = vpop.permute.xlu1 %1133 }
0x1532   :  { %v1118_v22 = vpop.permute.xlu0 %1117 }
0x1533   :  { %v1122_v23 = vmax.f32 %v1929_v62, %v1118_v22 }
0x1535   :  { %v1130_v25 = vmax.f32 %v1122_v23, %v1126_v7 }
0x1537   :  { %v1138_v27 = vmax.f32 %v1130_v25, %v1134_v26 }
0x153a   :  { %v1142_v28 = vpop.permute.xlu0 %1141 }
0x153b   :  { %v1146_v29 = vmax.f32 %v1138_v27, %v1142_v28 }
0x153d   :  { %1157 = vrot.lane.b32.xlu2 %v1146_v29, %s1554_s18  ;;  %1181 = vrot.lane.b32.xlu0 %v1146_v29, %s1558_s4  ;;  %v1148_v13 = vsub.f32 %v1929_v62, %v1146_v29 }
0x153e   :  { %1169 = vrot.lane.b32.xlu1 %v1146_v29, %s1565_s1 }
0x153f   :  { %v1151_v58 = vmul.f32 1.442695, %v1148_v13 }
0x1545   :  { %1193 = vrot.lane.b32.xlu2 %v1146_v29, %s1560_s12 }
0x1546   :  { %1191 = vrot.lane.b32.xlu1 %v1948_v21, %s1560_s12 }
0x157e   :  { %v1180_v30 = vpop.permute.xlu2 %1179 }
0x157f   :  { %v1185_v31 = vsub.f32 %v1909_v18, %v1180_v30 }
0x1581   :  { %v1187_v11 = vmul.f32 1.442695, %v1185_v31 }
0x1583   :  { %1452 = vpow2.f32 %v1187_v11 }
0x1589   :  { %v1964_v32 = vpop.eup %1452 }
0x158a   :  { %1225 = vrot.lane.b32.xlu1 %v1964_v32, %s1562_s24 }
0x1596   :  { %v1168_v33 = vpop.permute.xlu0 %1167 }
0x1597   :  { %v1158_v34 = vpop.permute.xlu2 %1157  ;;  %v1173_v35 = vsub.f32 %v1909_v18, %v1168_v33  ;;  %v1156_v36 = vpop.permute.xlu1 %1155 }
0x1598   :  { %v1162_v24 = vsub.f32 %v1929_v62, %v1158_v34  ;;  %v1161_v3 = vsub.f32 %v1909_v18, %v1156_v36 }
0x1599   :  { %v1175_v37 = vmul.f32 1.442695, %v1173_v35 }
0x159a   :  { %v1165_v38 = vmul.f32 1.442695, %v1162_v24  ;;  %v1163_v39 = vmul.f32 1.442695, %v1161_v3 }
0x159b   :  { %1454 = vpow2.f32 %v1175_v37 }
0x159c   :  { %1456 = vpow2.f32 %v1165_v38 }
0x159d   :  { %1458 = vpow2.f32 %v1163_v39 }
0x159f   :  { %v1194_v55 = vpop.permute.xlu2 %1193 }
0x15a0   :  { %v1198_v40 = vsub.f32 %v1929_v62, %v1194_v55 }
0x15a1   :  { %v1972_v41 = vpop.eup %1454 }
0x15a2   :  { %v1974_v42 = vpop.eup %1456  ;;  %v1201_v43 = vmul.f32 1.442695, %v1198_v40  ;;  %1215 = vrot.lane.b32.xlu2 %v1972_v41, %s1564_s28 }
0x15a3   :  { %v1978_v44 = vpop.eup %1458  ;;  %1207 = vrot.lane.b32.xlu1 %v1974_v42, %s1563_s25 }
0x15a4   :  { %1460 = vpow2.f32 %v1201_v43  ;;  %1205 = vrot.lane.b32.xlu0 %v1978_v44, %s1563_s25 }
0x15aa   :  { %v1984_v45 = vpop.eup %1460 }
0x15ab   :  { %1237 = vrot.lane.b32.xlu1 %v1984_v45, %s1561_s3 }
0x15af   :  { %v1182_v46 = vpop.permute.xlu0 %1181 }
0x15b0   :  { %v1186_v52 = vsub.f32 %v1929_v62, %v1182_v46  ;;  %v1170_v53 = vpop.permute.xlu1 %1169 }
0x15b1   :  { %v1174_v54 = vsub.f32 %v1929_v62, %v1170_v53 }
0x15b2   :  { %v1189_v56 = vmul.f32 1.442695, %v1186_v52 }
0x15b3   :  { %v1177_v57 = vmul.f32 1.442695, %v1174_v54 }
0x15b4   :  { %1462 = vpow2.f32 %v1189_v56 }
0x15b5   :  { %1464 = vpow2.f32 %v1177_v57 }
0x15b8   :  { %v1192_v14 = vpop.permute.xlu1 %1191 }
0x15b9   :  { %v1197_v16 = vsub.f32 %v1909_v18, %v1192_v14 }
0x15ba   :  { %v1991_v48 = vpop.eup %1462 }
0x15bb   :  { %v1993_v49 = vpop.eup %1464  ;;  %v1199_v20 = vmul.f32 1.442695, %v1197_v16  ;;  %1227 = vrot.lane.b32.xlu2 %v1991_v48, %s1562_s24 }
0x15bc   :  { %1217 = vrot.lane.b32.xlu0 %v1993_v49, %s1564_s28 }
0x15bd   :  { %1466 = vpow2.f32 %v1199_v20 }
0x15be   :  { %1468 = vpow2.f32 %v1149_v17 }
0x15bf   :  { %1470 = vpow2.f32 %v1151_v58 }
0x15c3   :  { %v1999_v50 = vpop.eup %1466 }
0x15c4   :  { %1235 = vrot.lane.b32.xlu0 %v1999_v50, %s1561_s3  ;;  %v1469_v61 = vpop.eup %1468 }
0x15c5   :  { %v1471_v63 = vpop.eup %1470 }
0x15fc   :  { %v1226_v15 = vpop.permute.xlu1 %1225  ;;  %v1216_v59 = vpop.permute.xlu2 %1215 }
0x1615   :  { %v1208_v60 = vpop.permute.xlu1 %1207  ;;  %v1228_v5 = vpop.permute.xlu2 %1227 }
0x1616   :  { %v1206_v19 = vpop.permute.xlu0 %1205  ;;  %v1212_v1 = vadd.f32 %v1471_v63, %v1208_v60 }
0x1617   :  { %v1211_v0 = vadd.f32 %v1469_v61, %v1206_v19 }
0x1619   :  { %v1221_v6 = vadd.f32 %v1216_v59, %v1211_v0 }
0x161b   :  { %v1231_v10 = vadd.f32 %v1226_v15, %v1221_v6 }
0x161d   :  { %v1238_v8 = vpop.permute.xlu1 %1237 }
0x162e   :  { %v1218_v2 = vpop.permute.xlu0 %1217 }
0x162f   :  { %v1222_v4 = vadd.f32 %v1218_v2, %v1212_v1 }
0x1631   :  { %v1232_v7 = vadd.f32 %v1228_v5, %v1222_v4 }
0x1633   :  { %v1242_v9 = vadd.f32 %v1238_v8, %v1232_v7 }
0x1635   :  { %1472 = vrcp.f32 %v1242_v9  ;;  %v1266_v26 = vand.u32 2147483647, %v1242_v9  ;;  %v1268_v27 = vand.u32 2147483648, %v1242_v9  ;;  %vm1262_vm6 = vweird.f32 %v1242_v9 }
0x1636   :  { %v1236_v47 = vpop.permute.xlu0 %1235 }
0x1637   :  { %v1241_v12 = vadd.f32 %v1236_v47, %v1231_v10  ;;  %vm1267_vm8 = vcmp.eq.f32.partialorder %v1266_v26, 8.507059e+37  ;;  %v1269_v33 = vor.u32 1.1754944e-38, %v1268_v27 }
0x1639   :  { %1474 = vrcp.f32 %v1241_v12  ;;  %v1254_v11 = vand.u32 2147483648, %v1241_v12  ;;  %v1252_v35 = vand.u32 2147483647, %v1241_v12  ;;  %vm1248_vm10 = vweird.f32 %v1241_v12 }
0x163b   :  { %v1473_v21 = vpop.eup %1472  ;;  %v1255_v38 = vor.u32 1.1754944e-38, %v1254_v11  ;;  %vm1253_vm12 = vcmp.eq.f32.partialorder %v1252_v35, 8.507059e+37 }
0x163c   :  { %v1258_v22 = vmul.f32 %v1473_v21, %v1242_v9  ;;  %vm1263_vm5 = vweird.f32 %v1473_v21 }
0x163d   :  { %vm1264_vm7 = vmor %vm1262_vm6, %vm1263_vm5 }
0x163e   :  { %v1259_v23 = vsub.f32 1.0, %v1258_v22 }
0x163f   :  { %v1475_v25 = vpop.eup %1474 }
0x1640   :  { %v1244_v28 = vmul.f32 %v1475_v25, %v1241_v12  ;;  %v1260_v29 = vmul.f32 %v1473_v21, %v1259_v23  ;;  %vm1249_vm9 = vweird.f32 %v1475_v25 }
0x1641   :  { %vm1250_vm11 = vmor %vm1248_vm10, %vm1249_vm9 }
0x1642   :  { %v1245_v30 = vsub.f32 1.0, %v1244_v28  ;;  %v1261_v31 = vadd.f32 %v1473_v21, %v1260_v29 }
0x1644   :  { %v1246_v34 = vmul.f32 %v1475_v25, %v1245_v30  ;;  %v1265_v36 = vsel %vm1264_vm7, %v1473_v21, %v1261_v31 }
0x1645   :  { %v1270_v24 = vsel %vm1267_vm8, %v1269_v33, %v1265_v36 }
0x1646   :  { %v1247_v3 = vadd.f32 %v1475_v25, %v1246_v34  ;;  %v1272_v37 = vmul.f32 %v1471_v63, %v1270_v24 }
0x1648   :  { %v1251_v39 = vsel %vm1250_vm11, %v1475_v25, %v1247_v3 }
0x1649   :  { %v1256_v55 = vsel %vm1253_vm12, %v1255_v38, %v1251_v39 }
0x164a   :  { %1291 = vrot.lane.b32.xlu0 %v1256_v55, %s1558_s4  ;;  %1283 = vrot.lane.b32.xlu1 %v1256_v55, %s1565_s1  ;;  %v1271_v40 = vmul.f32 %v1469_v61, %v1256_v55 }
0x164b   :  { %1275 = vrot.lane.b32.xlu2 %v1256_v55, %s1554_s18 }
0x1652   :  { %1277 = vrot.lane.b32.xlu0 %v1270_v24, %s1554_s18  ;;  %1293 = vrot.lane.b32.xlu1 %v1270_v24, %s1558_s4 }
0x1653   :  { %1285 = vrot.lane.b32.xlu2 %v1270_v24, %s1565_s1 }
0x165a   :  { %1301 = vrot.lane.b32.xlu0 %v1270_v24, %s1560_s12 }
0x165b   :  { %1299 = vrot.lane.b32.xlu2 %v1256_v55, %s1560_s12 }
0x16a5   :  { %v1276_v43 = vpop.permute.xlu2 %1275 }
0x16a6   :  { %v1281_v52 = vmul.f32 %v1978_v44, %v1276_v43 }
0x16a8   :  { %v1308_v16 = vsel %vm1307_vm13, %v1271_v40, %v1281_v52 }
0x16ad   :  { %v1286_v46 = vpop.permute.xlu2 %1285 }
0x16b5   :  { %v1300_v53 = vpop.permute.xlu2 %1299 }
0x16b6   :  { %v1305_v20 = vmul.f32 %v1999_v50, %v1300_v53  ;;  %v1290_v50 = vmul.f32 %v1993_v49, %v1286_v46 }
0x16bc   :  { %v1292_v54 = vpop.permute.xlu0 %1291  ;;  %v1284_v56 = vpop.permute.xlu1 %1283 }
0x16bd   :  { %v1297_v57 = vmul.f32 %v1964_v32, %v1292_v54  ;;  %v1289_v14 = vmul.f32 %v1972_v41, %v1284_v56 }
0x16bf   :  { %v1311_v51 = vsel %vm1310_vm14, %v1308_v16, %v1289_v14 }
0x16c0   :  { %v1314_v13 = vsel %vm1313_vm15, %v1311_v51, %v1297_v57 }
0x16c1   :  { %v1316_v44 = vsel %vm149_vm2, %v1314_v13, %v1305_v20 }
0x16c2   :  { %v1319_v15 = vsel %vm1318_vm0, %v1316_v44, %v1909_v18 }
0x16c3   :  { %1321 = vst [vmem:[%s2049_s9] sm:$0xff] %v1319_v15 }
0x16c4   :  { %v1278_v32 = vpop.permute.xlu0 %1277  ;;  %v1294_v58 = vpop.permute.xlu1 %1293 }
0x16c5   :  { %v1282_v41 = vmul.f32 %v1974_v42, %v1278_v32  ;;  %v1298_v59 = vmul.f32 %v1991_v48, %v1294_v58 }
0x16c7   :  { %v1309_v17 = vsel %vm1307_vm13, %v1272_v37, %v1282_v41 }
0x16c8   :  { %v1312_v19 = vsel %vm1310_vm14, %v1309_v17, %v1290_v50 }
0x16c9   :  { %v1315_v18 = vsel %vm1313_vm15, %v1312_v19, %v1298_v59 }
0x16cc   :  { %v1302_v60 = vpop.permute.xlu0 %1301 }
0x16cd   :  { %v1306_v61 = vmul.f32 %v1984_v45, %v1302_v60 }
0x16cf   :  { %v1317_v63 = vsel %vm149_vm2, %v1315_v18, %v1306_v61 }
0x16d0   :  { %v1320_v0 = vsel %vm1318_vm0, %v1317_v63, %v1929_v62 }
0x16d1   :  { %1322 = vst [vmem:[%s2049_s9 + $0x18] sm:$0xff] %v1320_v0 }
0x16d2   :  { %1335 = vsyncpa [#allocation4], 1 }
0x16d3   :  { %1336 = vsyncpa [#allocation6], 1 }

</bundles_post_ra>
